<compile_context>
chip_gen: v7x
topology: tpu7x:2x2x1
jax: 0.10.0
libtpu: 0.0.40
codegen_flags: <defaults>
</compile_context>

<pallas_src>
import functools
import math

import jax
import jax.numpy as jnp
from jax import lax
from jax.experimental import pallas as pl
from jax.experimental.pallas import tpu as pltpu


def _cross_attn_ln_kernel(num_heads, eps, approx_recip,
                          q_ref,     # (TB, Sq,  H)  f32   query = hidden_states rows
                          kv_ref,    # (TB, Skv, H)  f32   key/value = ngram hidden rows
                          wq_ref,    # (H, H)   mxu dtype, scale folded:  x @ wq == scale * (x @ Wq^T)
                          wkv_ref,   # (H, 2H)  mxu dtype:  x @ wkv == [x @ Wk^T | x @ Wv^T]
                          wo_ref,    # (H, H)   mxu dtype:  ctx @ wo == ctx @ Wout^T
                          bqkv_ref,  # (1, 3H)  f32: [scale*bq | bk | bv]
                          pkt_ref,   # (3, H)   f32: rows = [out_proj bias; ln gamma; ln beta]
                          out_ref):  # (TB, Sq, H)
    TB, Sq, H = q_ref.shape
    Skv = kv_ref.shape[1]
    nh = num_heads
    hd = H // nh
    mxu = wq_ref.dtype

    q = q_ref[...]                                      # f32, kept for the residual
    q2 = q.reshape(TB * Sq, H)
    kv2 = kv_ref[...].reshape(TB * Skv, H)

    bqkv = bqkv_ref[...]                                # (1, 3H)
    bq = bqkv[:, :H]
    bkv = bqkv[:, H:]

    # Lane-dense fused projections (MXU), f32 accumulation.
    Qp = (jnp.dot(q2.astype(mxu), wq_ref[...],
                  preferred_element_type=jnp.float32) + bq).reshape(TB, Sq, H)
    KV = jnp.dot(kv2.astype(mxu), wkv_ref[...],
                 preferred_element_type=jnp.float32) + bkv                     # (TB*Skv, 2H)
    Kp = KV[:, :H].reshape(TB, Skv, H)
    Vp = KV[:, H:].reshape(TB, Skv, H)

    # Per-head attention (statically unrolled; 1/sqrt(hd) already folded into Wq/bq).
    ctx_heads = []
    for h in range(nh):
        sl = slice(h * hd, (h + 1) * hd)
        qh = Qp[:, :, sl].astype(mxu)                   # (TB, Sq,  hd)
        kh = Kp[:, :, sl].astype(mxu)                   # (TB, Skv, hd)
        vh = Vp[:, :, sl].astype(mxu)                   # (TB, Skv, hd)

        s = jnp.einsum("bqd,bkd->bqk", qh, kh,
                       preferred_element_type=jnp.float32)                     # (TB, Sq, Skv)
        m = jnp.max(s, axis=-1, keepdims=True)
        p = jnp.exp(s - m)                              # unnormalized probs (f32)
        denom = jnp.sum(p, axis=-1, keepdims=True)      # (TB, Sq, 1)
        # TODO(synk): attention-prob dropout (training mode) not implemented; eval identity.

        ctx_h = jnp.einsum("bqk,bkd->bqd", p.astype(mxu), vh,
                           preferred_element_type=jnp.float32)                 # (TB, Sq, hd)
        # Deferred softmax normalization on the narrow (Sq, hd) tile.
        ctx_heads.append(ctx_h * pl.reciprocal(denom, approx=approx_recip))

    ctx = jnp.concatenate(ctx_heads, axis=-1).reshape(TB * Sq, H)

    # Fused output projection: single MXU GEMM over all heads.
    attn = jnp.dot(ctx.astype(mxu), wo_ref[...],
                   preferred_element_type=jnp.float32)                         # (TB*Sq, H)

    params = pkt_ref[...]
    bo, gamma, beta = params[0:1, :], params[1:2, :], params[2:3, :]

    # Residual (dropout = identity in eval) + out_proj bias, then LayerNorm over H (f32).
    x = q2 + attn + bo
    mean = jnp.mean(x, axis=-1, keepdims=True)
    c = x - mean
    var = jnp.mean(c * c, axis=-1, keepdims=True)
    y = c * lax.rsqrt(var + eps)
    out_ref[...] = (y * gamma + beta).reshape(TB, Sq, H).astype(out_ref.dtype)


def attention_layer_forward(hidden_states, ngram_hidden, layer_params, layer_index,
                            num_heads=8, eps=1e-5, mxu_dtype=jnp.float32, batch_tile=None):
    """Pallas forward of AttentionLayer.forward(hidden_states, ngram_hidden, layer_index)."""
    B, Sq, H = hidden_states.shape
    Skv = ngram_hidden.shape[1]
    nh = num_heads
    assert H % nh == 0
    hd = H // nh

    p = layer_params[layer_index]
    w_in = p["in_proj_weight"]        # (3H, H)  torch Linear layout: y = x @ W^T + b
    b_in = p["in_proj_bias"]          # (3H,)
    w_out = p["out_proj_weight"]      # (H, H)
    b_out = p["out_proj_bias"]        # (H,)
    gamma = p["ln_weight"]            # (H,)
    beta = p["ln_bias"]               # (H,)

    scale = 1.0 / math.sqrt(hd)

    # Pre-transpose into "x @ W" form, fold attention scale into Wq/bq, fuse [Wk|Wv],
    # cast MXU operands once here (not per grid step).
    wq = (w_in[:H].T * scale).astype(mxu_dtype)                                  # (H, H)
    wkv = jnp.concatenate([w_in[H:2 * H].T, w_in[2 * H:].T], axis=1).astype(mxu_dtype)  # (H, 2H)
    wo = w_out.T.astype(mxu_dtype)                                               # (H, H)
    bqkv = jnp.concatenate([b_in[:H] * scale, b_in[H:]]).reshape(1, 3 * H).astype(jnp.float32)
    pkt = jnp.stack([b_out, gamma, beta], axis=0).astype(jnp.float32)            # (3, H)

    # Batch tile: largest divisor of B that (a) leaves >= 2 grid steps (keeps both v7x
    # TensorCores busy) and (b) keeps the double-buffered activation blocks small.
    if batch_tile is None:
        bytes_per_row = (2 * Sq + Skv) * H * 4
        cap = max(1, (8 * 1024 * 1024) // max(1, 2 * bytes_per_row))
        batch_tile = 1
        for t in range(min(B // 2, cap), 0, -1):
            if B % t == 0:
                batch_tile = t
                break
    TB = batch_tile
    assert B % TB == 0, (B, TB)

    kernel = functools.partial(_cross_attn_ln_kernel, nh, float(eps),
                               mxu_dtype == jnp.bfloat16)

    out = pl.pallas_call(
        kernel,
        out_shape=jax.ShapeDtypeStruct((B, Sq, H), hidden_states.dtype),
        grid=(B // TB,),
        in_specs=[
            pl.BlockSpec((TB, Sq, H), lambda b: (b, 0, 0)),      # query rows (pipelined)
            pl.BlockSpec((TB, Skv, H), lambda b: (b, 0, 0)),     # key/value rows (pipelined)
            pl.BlockSpec((H, H), lambda b: (0, 0)),              # Wq (VMEM-resident)
            pl.BlockSpec((H, 2 * H), lambda b: (0, 0)),          # [Wk|Wv] (VMEM-resident)
            pl.BlockSpec((H, H), lambda b: (0, 0)),              # Wo (VMEM-resident)
            pl.BlockSpec((1, 3 * H), lambda b: (0, 0)),          # fused QKV bias
            pl.BlockSpec((3, H), lambda b: (0, 0)),              # [b_out; gamma; beta]
        ],
        out_specs=pl.BlockSpec((TB, Sq, H), lambda b: (b, 0, 0)),
        compiler_params=pltpu.CompilerParams(dimension_semantics=("parallel",)),
    )(hidden_states, ngram_hidden, wq, wkv, wo, bqkv, pkt)
    return out


if __name__ == "__main__":
    # Small config consistent with the module.
    B, Sq, Skv = 2, 8, 8      # batch, query seq, key/value seq
    HIDDEN = 32               # hidden_size
    NUM_HEADS = 8             # num_heads -> head_dim = 4
    NUM_LAYERS = 2
    EPS = 1e-5                # nn.LayerNorm default
    HD = HIDDEN // NUM_HEADS

    key = jax.random.PRNGKey(0)
    keys = jax.random.split(key, 2 + NUM_LAYERS * 6)
    hidden_states = jax.random.normal(keys[0], (B, Sq, HIDDEN), dtype=jnp.float32)
    ngram_hidden = jax.random.normal(keys[1], (B, Skv, HIDDEN), dtype=jnp.float32)

    layer_params = []
    ki = 2
    for _ in range(NUM_LAYERS):
        layer_params.append({
            "in_proj_weight": 0.05 * jax.random.normal(keys[ki], (3 * HIDDEN, HIDDEN), jnp.float32),
            "in_proj_bias": 0.02 * jax.random.normal(keys[ki + 1], (3 * HIDDEN,), jnp.float32),
            "out_proj_weight": 0.05 * jax.random.normal(keys[ki + 2], (HIDDEN, HIDDEN), jnp.float32),
            "out_proj_bias": 0.02 * jax.random.normal(keys[ki + 3], (HIDDEN,), jnp.float32),
            "ln_weight": 1.0 + 0.1 * jax.random.normal(keys[ki + 4], (HIDDEN,), jnp.float32),
            "ln_bias": 0.1 * jax.random.normal(keys[ki + 5], (HIDDEN,), jnp.float32),
        })
        ki += 6

    layer_index = 1

    # f32-MXU run (exact path) and bf16-MXU run (perf path; softmax / LN stay f32).
    out_f32 = attention_layer_forward(hidden_states, ngram_hidden, layer_params,
                                      layer_index, num_heads=NUM_HEADS, eps=EPS,
                                      mxu_dtype=jnp.float32)
    jax.block_until_ready(out_f32)
    out_bf16 = attention_layer_forward(hidden_states, ngram_hidden, layer_params,
                                       layer_index, num_heads=NUM_HEADS, eps=EPS,
                                       mxu_dtype=jnp.bfloat16)
    jax.block_until_ready(out_bf16)

    # Pure-JAX reference: eval-mode MultiheadAttention + residual + LayerNorm.
    p = layer_params[layer_index]
    H = HIDDEN
    hp = lax.Precision.HIGHEST
    wq_r, wk_r, wv_r = p["in_proj_weight"][:H], p["in_proj_weight"][H:2 * H], p["in_proj_weight"][2 * H:]
    bq_r, bk_r, bv_r = p["in_proj_bias"][:H], p["in_proj_bias"][H:2 * H], p["in_proj_bias"][2 * H:]
    Q = jnp.einsum("bsh,oh->bso", hidden_states, wq_r, precision=hp) + bq_r
    K = jnp.einsum("bsh,oh->bso", ngram_hidden, wk_r, precision=hp) + bk_r
    V = jnp.einsum("bsh,oh->bso", ngram_hidden, wv_r, precision=hp) + bv_r

    def split_heads(x, S):
        return x.reshape(B, S, NUM_HEADS, HD).transpose(0, 2, 1, 3)

    Qh, Kh, Vh = split_heads(Q, Sq), split_heads(K, Skv), split_heads(V, Skv)
    scores = jnp.einsum("bnqd,bnkd->bnqk", Qh, Kh, precision=hp) / jnp.sqrt(float(HD))
    probs = jax.nn.softmax(scores, axis=-1)
    ctx = jnp.einsum("bnqk,bnkd->bnqd", probs, Vh, precision=hp)
    ctx = ctx.transpose(0, 2, 1, 3).reshape(B, Sq, HIDDEN)
    attn = jnp.einsum("bsh,oh->bso", ctx, p["out_proj_weight"], precision=hp) + p["out_proj_bias"]
    x = hidden_states + attn
    mean = x.mean(-1, keepdims=True)
    var = ((x - mean) ** 2).mean(-1, keepdims=True)
    ref = (x - mean) / jnp.sqrt(var + EPS) * p["ln_weight"] + p["ln_bias"]

    assert out_f32.shape == (B, Sq, HIDDEN)
    assert jnp.allclose(out_f32, ref, atol=1e-3, rtol=1e-3), float(jnp.max(jnp.abs(out_f32 - ref)))
    assert jnp.allclose(out_bf16, ref, atol=2e-2, rtol=2e-2), float(jnp.max(jnp.abs(out_bf16 - ref)))

    print("KERNEL_OK")
</pallas_src>

<mosaic_0001>
module attributes {stable_mosaic.version = 11 : i64} {
  func.func @_cross_attn_ln_kernel(%arg0: i32, %arg1: memref<1x8x32xf32, #tpu.memory_space<vmem>>, %arg2: memref<1x8x32xf32, #tpu.memory_space<vmem>>, %arg3: memref<32x32xf32, #tpu.memory_space<vmem>>, %arg4: memref<32x64xf32, #tpu.memory_space<vmem>>, %arg5: memref<32x32xf32, #tpu.memory_space<vmem>>, %arg6: memref<1x96xf32, #tpu.memory_space<vmem>>, %arg7: memref<3x32xf32, #tpu.memory_space<vmem>>, %arg8: memref<1x8x32xf32, #tpu.memory_space<vmem>>) attributes {dimension_semantics = [#tpu.dimension_semantics<parallel>], iteration_bounds = array<i64: 2>, scalar_prefetch = 0 : i64, scratch_operands = 0 : i64, tpu.core_type = #tpu.core_type<tc>, window_params = [{transform_indices = @transform_0, window_bounds = array<i64: 1, 8, 32>}, {transform_indices = @transform_1, window_bounds = array<i64: 1, 8, 32>}, {pipeline_mode = #tpu.pipeline_mode<synchronous>, transform_indices = @transform_2, window_bounds = array<i64: 32, 32>}, {pipeline_mode = #tpu.pipeline_mode<synchronous>, transform_indices = @transform_3, window_bounds = array<i64: 32, 64>}, {pipeline_mode = #tpu.pipeline_mode<synchronous>, transform_indices = @transform_4, window_bounds = array<i64: 32, 32>}, {pipeline_mode = #tpu.pipeline_mode<synchronous>, transform_indices = @transform_5, window_bounds = array<i64: 1, 96>}, {pipeline_mode = #tpu.pipeline_mode<synchronous>, transform_indices = @transform_6, window_bounds = array<i64: 3, 32>}, {transform_indices = @transform_7, window_bounds = array<i64: 1, 8, 32>}]} {
    %c0 = arith.constant 0 : index
    %c0_0 = arith.constant 0 : index
    %c0_1 = arith.constant 0 : index
    %0 = vector.load %arg1[%c0, %c0_0, %c0_1] : memref<1x8x32xf32, #tpu.memory_space<vmem>>, vector<1x8x32xf32>
    %1 = vector.shape_cast %0 : vector<1x8x32xf32> to vector<8x32xf32>
    %c0_2 = arith.constant 0 : index
    %c0_3 = arith.constant 0 : index
    %c0_4 = arith.constant 0 : index
    %2 = vector.load %arg2[%c0_2, %c0_3, %c0_4] : memref<1x8x32xf32, #tpu.memory_space<vmem>>, vector<1x8x32xf32>
    %3 = vector.shape_cast %2 : vector<1x8x32xf32> to vector<8x32xf32>
    %c0_5 = arith.constant 0 : index
    %c0_6 = arith.constant 0 : index
    %4 = vector.load %arg6[%c0_5, %c0_6] : memref<1x96xf32, #tpu.memory_space<vmem>>, vector<1x96xf32>
    %5 = vector.extract_strided_slice %4 {offsets = [0, 0], sizes = [1, 32], strides = [1, 1]} : vector<1x96xf32> to vector<1x32xf32>
    %6 = vector.extract_strided_slice %4 {offsets = [0, 32], sizes = [1, 64], strides = [1, 1]} : vector<1x96xf32> to vector<1x64xf32>
    %c0_7 = arith.constant 0 : index
    %c0_8 = arith.constant 0 : index
    %7 = vector.load %arg3[%c0_7, %c0_8] : memref<32x32xf32, #tpu.memory_space<vmem>>, vector<32x32xf32>
    %cst = arith.constant dense<0.000000e+00> : vector<8x32xf32>
    %8 = tpu.matmul %1, %7, %cst {dimension_numbers = #tpu.dot_dimension_numbers<[1], [0], [0], [1], [0, 0, 1, 1], [], []>} : vector<8x32xf32>, vector<32x32xf32>, vector<8x32xf32> -> vector<8x32xf32>
    %9 = vector.broadcast %5 : vector<1x32xf32> to vector<8x32xf32>
    %10 = arith.addf %8, %9 : vector<8x32xf32>
    %11 = vector.shape_cast %10 : vector<8x32xf32> to vector<1x8x32xf32>
    %c0_9 = arith.constant 0 : index
    %c0_10 = arith.constant 0 : index
    %12 = vector.load %arg4[%c0_9, %c0_10] : memref<32x64xf32, #tpu.memory_space<vmem>>, vector<32x64xf32>
    %cst_11 = arith.constant dense<0.000000e+00> : vector<8x64xf32>
    %13 = tpu.matmul %3, %12, %cst_11 {dimension_numbers = #tpu.dot_dimension_numbers<[1], [0], [0], [1], [0, 0, 1, 1], [], []>} : vector<8x32xf32>, vector<32x64xf32>, vector<8x64xf32> -> vector<8x64xf32>
    %14 = vector.broadcast %6 : vector<1x64xf32> to vector<8x64xf32>
    %15 = arith.addf %13, %14 : vector<8x64xf32>
    %16 = vector.extract_strided_slice %15 {offsets = [0, 0], sizes = [8, 32], strides = [1, 1]} : vector<8x64xf32> to vector<8x32xf32>
    %17 = vector.shape_cast %16 : vector<8x32xf32> to vector<1x8x32xf32>
    %18 = vector.extract_strided_slice %15 {offsets = [0, 32], sizes = [8, 32], strides = [1, 1]} : vector<8x64xf32> to vector<8x32xf32>
    %19 = vector.shape_cast %18 : vector<8x32xf32> to vector<1x8x32xf32>
    %20 = vector.extract_strided_slice %11 {offsets = [0, 0, 0], sizes = [1, 8, 4], strides = [1, 1, 1]} : vector<1x8x32xf32> to vector<1x8x4xf32>
    %21 = vector.extract_strided_slice %17 {offsets = [0, 0, 0], sizes = [1, 8, 4], strides = [1, 1, 1]} : vector<1x8x32xf32> to vector<1x8x4xf32>
    %22 = vector.extract_strided_slice %19 {offsets = [0, 0, 0], sizes = [1, 8, 4], strides = [1, 1, 1]} : vector<1x8x32xf32> to vector<1x8x4xf32>
    "tpu.trace_start"() <{level = 10 : i32, message = "bqd,bkd->bqk"}> : () -> ()
    %cst_12 = arith.constant dense<0.000000e+00> : vector<1x8x8xf32>
    %23 = tpu.matmul %20, %21, %cst_12 {dimension_numbers = #tpu.dot_dimension_numbers<[2], [2], [1], [1], [0, 0, 0, 1, 1, 1], [0], [0]>} : vector<1x8x4xf32>, vector<1x8x4xf32>, vector<1x8x8xf32> -> vector<1x8x8xf32>
    "tpu.trace_stop"() : () -> ()
    %cst_13 = arith.constant dense<0xFF800000> : vector<1x8xf32>
    %24 = vector.multi_reduction <maximumf>, %23, %cst_13 [2] : vector<1x8x8xf32> to vector<1x8xf32>
    %25 = vector.shape_cast %24 : vector<1x8xf32> to vector<1x8x1xf32>
    %26 = vector.broadcast %25 : vector<1x8x1xf32> to vector<1x8x8xf32>
    %27 = arith.subf %23, %26 : vector<1x8x8xf32>
    %28 = math.exp %27 : vector<1x8x8xf32>
    %cst_14 = arith.constant dense<0.000000e+00> : vector<1x8xf32>
    %29 = vector.multi_reduction <add>, %28, %cst_14 [2] : vector<1x8x8xf32> to vector<1x8xf32>
    %30 = vector.shape_cast %29 : vector<1x8xf32> to vector<1x8x1xf32>
    "tpu.trace_start"() <{level = 10 : i32, message = "bqk,bkd->bqd"}> : () -> ()
    %cst_15 = arith.constant dense<0.000000e+00> : vector<1x8x4xf32>
    %31 = tpu.matmul %28, %22, %cst_15 {dimension_numbers = #tpu.dot_dimension_numbers<[2], [1], [1], [2], [0, 0, 0, 1, 1, 2], [0], [0]>} : vector<1x8x8xf32>, vector<1x8x4xf32>, vector<1x8x4xf32> -> vector<1x8x4xf32>
    "tpu.trace_stop"() : () -> ()
    %32 = tpu.reciprocal %30 : vector<1x8x1xf32> -> vector<1x8x1xf32>
    %33 = vector.broadcast %32 : vector<1x8x1xf32> to vector<1x8x4xf32>
    %34 = arith.mulf %31, %33 : vector<1x8x4xf32>
    %35 = vector.extract_strided_slice %11 {offsets = [0, 0, 4], sizes = [1, 8, 4], strides = [1, 1, 1]} : vector<1x8x32xf32> to vector<1x8x4xf32>
    %36 = vector.extract_strided_slice %17 {offsets = [0, 0, 4], sizes = [1, 8, 4], strides = [1, 1, 1]} : vector<1x8x32xf32> to vector<1x8x4xf32>
    %37 = vector.extract_strided_slice %19 {offsets = [0, 0, 4], sizes = [1, 8, 4], strides = [1, 1, 1]} : vector<1x8x32xf32> to vector<1x8x4xf32>
    "tpu.trace_start"() <{level = 10 : i32, message = "bqd,bkd->bqk"}> : () -> ()
    %cst_16 = arith.constant dense<0.000000e+00> : vector<1x8x8xf32>
    %38 = tpu.matmul %35, %36, %cst_16 {dimension_numbers = #tpu.dot_dimension_numbers<[2], [2], [1], [1], [0, 0, 0, 1, 1, 1], [0], [0]>} : vector<1x8x4xf32>, vector<1x8x4xf32>, vector<1x8x8xf32> -> vector<1x8x8xf32>
    "tpu.trace_stop"() : () -> ()
    %cst_17 = arith.constant dense<0xFF800000> : vector<1x8xf32>
    %39 = vector.multi_reduction <maximumf>, %38, %cst_17 [2] : vector<1x8x8xf32> to vector<1x8xf32>
    %40 = vector.shape_cast %39 : vector<1x8xf32> to vector<1x8x1xf32>
    %41 = vector.broadcast %40 : vector<1x8x1xf32> to vector<1x8x8xf32>
    %42 = arith.subf %38, %41 : vector<1x8x8xf32>
    %43 = math.exp %42 : vector<1x8x8xf32>
    %cst_18 = arith.constant dense<0.000000e+00> : vector<1x8xf32>
    %44 = vector.multi_reduction <add>, %43, %cst_18 [2] : vector<1x8x8xf32> to vector<1x8xf32>
    %45 = vector.shape_cast %44 : vector<1x8xf32> to vector<1x8x1xf32>
    "tpu.trace_start"() <{level = 10 : i32, message = "bqk,bkd->bqd"}> : () -> ()
    %cst_19 = arith.constant dense<0.000000e+00> : vector<1x8x4xf32>
    %46 = tpu.matmul %43, %37, %cst_19 {dimension_numbers = #tpu.dot_dimension_numbers<[2], [1], [1], [2], [0, 0, 0, 1, 1, 2], [0], [0]>} : vector<1x8x8xf32>, vector<1x8x4xf32>, vector<1x8x4xf32> -> vector<1x8x4xf32>
    "tpu.trace_stop"() : () -> ()
    %47 = tpu.reciprocal %45 : vector<1x8x1xf32> -> vector<1x8x1xf32>
    %48 = vector.broadcast %47 : vector<1x8x1xf32> to vector<1x8x4xf32>
    %49 = arith.mulf %46, %48 : vector<1x8x4xf32>
    %50 = vector.extract_strided_slice %11 {offsets = [0, 0, 8], sizes = [1, 8, 4], strides = [1, 1, 1]} : vector<1x8x32xf32> to vector<1x8x4xf32>
    %51 = vector.extract_strided_slice %17 {offsets = [0, 0, 8], sizes = [1, 8, 4], strides = [1, 1, 1]} : vector<1x8x32xf32> to vector<1x8x4xf32>
    %52 = vector.extract_strided_slice %19 {offsets = [0, 0, 8], sizes = [1, 8, 4], strides = [1, 1, 1]} : vector<1x8x32xf32> to vector<1x8x4xf32>
    "tpu.trace_start"() <{level = 10 : i32, message = "bqd,bkd->bqk"}> : () -> ()
    %cst_20 = arith.constant dense<0.000000e+00> : vector<1x8x8xf32>
    %53 = tpu.matmul %50, %51, %cst_20 {dimension_numbers = #tpu.dot_dimension_numbers<[2], [2], [1], [1], [0, 0, 0, 1, 1, 1], [0], [0]>} : vector<1x8x4xf32>, vector<1x8x4xf32>, vector<1x8x8xf32> -> vector<1x8x8xf32>
    "tpu.trace_stop"() : () -> ()
    %cst_21 = arith.constant dense<0xFF800000> : vector<1x8xf32>
    %54 = vector.multi_reduction <maximumf>, %53, %cst_21 [2] : vector<1x8x8xf32> to vector<1x8xf32>
    %55 = vector.shape_cast %54 : vector<1x8xf32> to vector<1x8x1xf32>
    %56 = vector.broadcast %55 : vector<1x8x1xf32> to vector<1x8x8xf32>
    %57 = arith.subf %53, %56 : vector<1x8x8xf32>
    %58 = math.exp %57 : vector<1x8x8xf32>
    %cst_22 = arith.constant dense<0.000000e+00> : vector<1x8xf32>
    %59 = vector.multi_reduction <add>, %58, %cst_22 [2] : vector<1x8x8xf32> to vector<1x8xf32>
    %60 = vector.shape_cast %59 : vector<1x8xf32> to vector<1x8x1xf32>
    "tpu.trace_start"() <{level = 10 : i32, message = "bqk,bkd->bqd"}> : () -> ()
    %cst_23 = arith.constant dense<0.000000e+00> : vector<1x8x4xf32>
    %61 = tpu.matmul %58, %52, %cst_23 {dimension_numbers = #tpu.dot_dimension_numbers<[2], [1], [1], [2], [0, 0, 0, 1, 1, 2], [0], [0]>} : vector<1x8x8xf32>, vector<1x8x4xf32>, vector<1x8x4xf32> -> vector<1x8x4xf32>
    "tpu.trace_stop"() : () -> ()
    %62 = tpu.reciprocal %60 : vector<1x8x1xf32> -> vector<1x8x1xf32>
    %63 = vector.broadcast %62 : vector<1x8x1xf32> to vector<1x8x4xf32>
    %64 = arith.mulf %61, %63 : vector<1x8x4xf32>
    %65 = vector.extract_strided_slice %11 {offsets = [0, 0, 12], sizes = [1, 8, 4], strides = [1, 1, 1]} : vector<1x8x32xf32> to vector<1x8x4xf32>
    %66 = vector.extract_strided_slice %17 {offsets = [0, 0, 12], sizes = [1, 8, 4], strides = [1, 1, 1]} : vector<1x8x32xf32> to vector<1x8x4xf32>
    %67 = vector.extract_strided_slice %19 {offsets = [0, 0, 12], sizes = [1, 8, 4], strides = [1, 1, 1]} : vector<1x8x32xf32> to vector<1x8x4xf32>
    "tpu.trace_start"() <{level = 10 : i32, message = "bqd,bkd->bqk"}> : () -> ()
    %cst_24 = arith.constant dense<0.000000e+00> : vector<1x8x8xf32>
    %68 = tpu.matmul %65, %66, %cst_24 {dimension_numbers = #tpu.dot_dimension_numbers<[2], [2], [1], [1], [0, 0, 0, 1, 1, 1], [0], [0]>} : vector<1x8x4xf32>, vector<1x8x4xf32>, vector<1x8x8xf32> -> vector<1x8x8xf32>
    "tpu.trace_stop"() : () -> ()
    %cst_25 = arith.constant dense<0xFF800000> : vector<1x8xf32>
    %69 = vector.multi_reduction <maximumf>, %68, %cst_25 [2] : vector<1x8x8xf32> to vector<1x8xf32>
    %70 = vector.shape_cast %69 : vector<1x8xf32> to vector<1x8x1xf32>
    %71 = vector.broadcast %70 : vector<1x8x1xf32> to vector<1x8x8xf32>
    %72 = arith.subf %68, %71 : vector<1x8x8xf32>
    %73 = math.exp %72 : vector<1x8x8xf32>
    %cst_26 = arith.constant dense<0.000000e+00> : vector<1x8xf32>
    %74 = vector.multi_reduction <add>, %73, %cst_26 [2] : vector<1x8x8xf32> to vector<1x8xf32>
    %75 = vector.shape_cast %74 : vector<1x8xf32> to vector<1x8x1xf32>
    "tpu.trace_start"() <{level = 10 : i32, message = "bqk,bkd->bqd"}> : () -> ()
    %cst_27 = arith.constant dense<0.000000e+00> : vector<1x8x4xf32>
    %76 = tpu.matmul %73, %67, %cst_27 {dimension_numbers = #tpu.dot_dimension_numbers<[2], [1], [1], [2], [0, 0, 0, 1, 1, 2], [0], [0]>} : vector<1x8x8xf32>, vector<1x8x4xf32>, vector<1x8x4xf32> -> vector<1x8x4xf32>
    "tpu.trace_stop"() : () -> ()
    %77 = tpu.reciprocal %75 : vector<1x8x1xf32> -> vector<1x8x1xf32>
    %78 = vector.broadcast %77 : vector<1x8x1xf32> to vector<1x8x4xf32>
    %79 = arith.mulf %76, %78 : vector<1x8x4xf32>
    %80 = vector.extract_strided_slice %11 {offsets = [0, 0, 16], sizes = [1, 8, 4], strides = [1, 1, 1]} : vector<1x8x32xf32> to vector<1x8x4xf32>
    %81 = vector.extract_strided_slice %17 {offsets = [0, 0, 16], sizes = [1, 8, 4], strides = [1, 1, 1]} : vector<1x8x32xf32> to vector<1x8x4xf32>
    %82 = vector.extract_strided_slice %19 {offsets = [0, 0, 16], sizes = [1, 8, 4], strides = [1, 1, 1]} : vector<1x8x32xf32> to vector<1x8x4xf32>
    "tpu.trace_start"() <{level = 10 : i32, message = "bqd,bkd->bqk"}> : () -> ()
    %cst_28 = arith.constant dense<0.000000e+00> : vector<1x8x8xf32>
    %83 = tpu.matmul %80, %81, %cst_28 {dimension_numbers = #tpu.dot_dimension_numbers<[2], [2], [1], [1], [0, 0, 0, 1, 1, 1], [0], [0]>} : vector<1x8x4xf32>, vector<1x8x4xf32>, vector<1x8x8xf32> -> vector<1x8x8xf32>
    "tpu.trace_stop"() : () -> ()
    %cst_29 = arith.constant dense<0xFF800000> : vector<1x8xf32>
    %84 = vector.multi_reduction <maximumf>, %83, %cst_29 [2] : vector<1x8x8xf32> to vector<1x8xf32>
    %85 = vector.shape_cast %84 : vector<1x8xf32> to vector<1x8x1xf32>
    %86 = vector.broadcast %85 : vector<1x8x1xf32> to vector<1x8x8xf32>
    %87 = arith.subf %83, %86 : vector<1x8x8xf32>
    %88 = math.exp %87 : vector<1x8x8xf32>
    %cst_30 = arith.constant dense<0.000000e+00> : vector<1x8xf32>
    %89 = vector.multi_reduction <add>, %88, %cst_30 [2] : vector<1x8x8xf32> to vector<1x8xf32>
    %90 = vector.shape_cast %89 : vector<1x8xf32> to vector<1x8x1xf32>
    "tpu.trace_start"() <{level = 10 : i32, message = "bqk,bkd->bqd"}> : () -> ()
    %cst_31 = arith.constant dense<0.000000e+00> : vector<1x8x4xf32>
    %91 = tpu.matmul %88, %82, %cst_31 {dimension_numbers = #tpu.dot_dimension_numbers<[2], [1], [1], [2], [0, 0, 0, 1, 1, 2], [0], [0]>} : vector<1x8x8xf32>, vector<1x8x4xf32>, vector<1x8x4xf32> -> vector<1x8x4xf32>
    "tpu.trace_stop"() : () -> ()
    %92 = tpu.reciprocal %90 : vector<1x8x1xf32> -> vector<1x8x1xf32>
    %93 = vector.broadcast %92 : vector<1x8x1xf32> to vector<1x8x4xf32>
    %94 = arith.mulf %91, %93 : vector<1x8x4xf32>
    %95 = vector.extract_strided_slice %11 {offsets = [0, 0, 20], sizes = [1, 8, 4], strides = [1, 1, 1]} : vector<1x8x32xf32> to vector<1x8x4xf32>
    %96 = vector.extract_strided_slice %17 {offsets = [0, 0, 20], sizes = [1, 8, 4], strides = [1, 1, 1]} : vector<1x8x32xf32> to vector<1x8x4xf32>
    %97 = vector.extract_strided_slice %19 {offsets = [0, 0, 20], sizes = [1, 8, 4], strides = [1, 1, 1]} : vector<1x8x32xf32> to vector<1x8x4xf32>
    "tpu.trace_start"() <{level = 10 : i32, message = "bqd,bkd->bqk"}> : () -> ()
    %cst_32 = arith.constant dense<0.000000e+00> : vector<1x8x8xf32>
    %98 = tpu.matmul %95, %96, %cst_32 {dimension_numbers = #tpu.dot_dimension_numbers<[2], [2], [1], [1], [0, 0, 0, 1, 1, 1], [0], [0]>} : vector<1x8x4xf32>, vector<1x8x4xf32>, vector<1x8x8xf32> -> vector<1x8x8xf32>
    "tpu.trace_stop"() : () -> ()
    %cst_33 = arith.constant dense<0xFF800000> : vector<1x8xf32>
    %99 = vector.multi_reduction <maximumf>, %98, %cst_33 [2] : vector<1x8x8xf32> to vector<1x8xf32>
    %100 = vector.shape_cast %99 : vector<1x8xf32> to vector<1x8x1xf32>
    %101 = vector.broadcast %100 : vector<1x8x1xf32> to vector<1x8x8xf32>
    %102 = arith.subf %98, %101 : vector<1x8x8xf32>
    %103 = math.exp %102 : vector<1x8x8xf32>
    %cst_34 = arith.constant dense<0.000000e+00> : vector<1x8xf32>
    %104 = vector.multi_reduction <add>, %103, %cst_34 [2] : vector<1x8x8xf32> to vector<1x8xf32>
    %105 = vector.shape_cast %104 : vector<1x8xf32> to vector<1x8x1xf32>
    "tpu.trace_start"() <{level = 10 : i32, message = "bqk,bkd->bqd"}> : () -> ()
    %cst_35 = arith.constant dense<0.000000e+00> : vector<1x8x4xf32>
    %106 = tpu.matmul %103, %97, %cst_35 {dimension_numbers = #tpu.dot_dimension_numbers<[2], [1], [1], [2], [0, 0, 0, 1, 1, 2], [0], [0]>} : vector<1x8x8xf32>, vector<1x8x4xf32>, vector<1x8x4xf32> -> vector<1x8x4xf32>
    "tpu.trace_stop"() : () -> ()
    %107 = tpu.reciprocal %105 : vector<1x8x1xf32> -> vector<1x8x1xf32>
    %108 = vector.broadcast %107 : vector<1x8x1xf32> to vector<1x8x4xf32>
    %109 = arith.mulf %106, %108 : vector<1x8x4xf32>
    %110 = vector.extract_strided_slice %11 {offsets = [0, 0, 24], sizes = [1, 8, 4], strides = [1, 1, 1]} : vector<1x8x32xf32> to vector<1x8x4xf32>
    %111 = vector.extract_strided_slice %17 {offsets = [0, 0, 24], sizes = [1, 8, 4], strides = [1, 1, 1]} : vector<1x8x32xf32> to vector<1x8x4xf32>
    %112 = vector.extract_strided_slice %19 {offsets = [0, 0, 24], sizes = [1, 8, 4], strides = [1, 1, 1]} : vector<1x8x32xf32> to vector<1x8x4xf32>
    "tpu.trace_start"() <{level = 10 : i32, message = "bqd,bkd->bqk"}> : () -> ()
    %cst_36 = arith.constant dense<0.000000e+00> : vector<1x8x8xf32>
    %113 = tpu.matmul %110, %111, %cst_36 {dimension_numbers = #tpu.dot_dimension_numbers<[2], [2], [1], [1], [0, 0, 0, 1, 1, 1], [0], [0]>} : vector<1x8x4xf32>, vector<1x8x4xf32>, vector<1x8x8xf32> -> vector<1x8x8xf32>
    "tpu.trace_stop"() : () -> ()
    %cst_37 = arith.constant dense<0xFF800000> : vector<1x8xf32>
    %114 = vector.multi_reduction <maximumf>, %113, %cst_37 [2] : vector<1x8x8xf32> to vector<1x8xf32>
    %115 = vector.shape_cast %114 : vector<1x8xf32> to vector<1x8x1xf32>
    %116 = vector.broadcast %115 : vector<1x8x1xf32> to vector<1x8x8xf32>
    %117 = arith.subf %113, %116 : vector<1x8x8xf32>
    %118 = math.exp %117 : vector<1x8x8xf32>
    %cst_38 = arith.constant dense<0.000000e+00> : vector<1x8xf32>
    %119 = vector.multi_reduction <add>, %118, %cst_38 [2] : vector<1x8x8xf32> to vector<1x8xf32>
    %120 = vector.shape_cast %119 : vector<1x8xf32> to vector<1x8x1xf32>
    "tpu.trace_start"() <{level = 10 : i32, message = "bqk,bkd->bqd"}> : () -> ()
    %cst_39 = arith.constant dense<0.000000e+00> : vector<1x8x4xf32>
    %121 = tpu.matmul %118, %112, %cst_39 {dimension_numbers = #tpu.dot_dimension_numbers<[2], [1], [1], [2], [0, 0, 0, 1, 1, 2], [0], [0]>} : vector<1x8x8xf32>, vector<1x8x4xf32>, vector<1x8x4xf32> -> vector<1x8x4xf32>
    "tpu.trace_stop"() : () -> ()
    %122 = tpu.reciprocal %120 : vector<1x8x1xf32> -> vector<1x8x1xf32>
    %123 = vector.broadcast %122 : vector<1x8x1xf32> to vector<1x8x4xf32>
    %124 = arith.mulf %121, %123 : vector<1x8x4xf32>
    %125 = vector.extract_strided_slice %11 {offsets = [0, 0, 28], sizes = [1, 8, 4], strides = [1, 1, 1]} : vector<1x8x32xf32> to vector<1x8x4xf32>
    %126 = vector.extract_strided_slice %17 {offsets = [0, 0, 28], sizes = [1, 8, 4], strides = [1, 1, 1]} : vector<1x8x32xf32> to vector<1x8x4xf32>
    %127 = vector.extract_strided_slice %19 {offsets = [0, 0, 28], sizes = [1, 8, 4], strides = [1, 1, 1]} : vector<1x8x32xf32> to vector<1x8x4xf32>
    "tpu.trace_start"() <{level = 10 : i32, message = "bqd,bkd->bqk"}> : () -> ()
    %cst_40 = arith.constant dense<0.000000e+00> : vector<1x8x8xf32>
    %128 = tpu.matmul %125, %126, %cst_40 {dimension_numbers = #tpu.dot_dimension_numbers<[2], [2], [1], [1], [0, 0, 0, 1, 1, 1], [0], [0]>} : vector<1x8x4xf32>, vector<1x8x4xf32>, vector<1x8x8xf32> -> vector<1x8x8xf32>
    "tpu.trace_stop"() : () -> ()
    %cst_41 = arith.constant dense<0xFF800000> : vector<1x8xf32>
    %129 = vector.multi_reduction <maximumf>, %128, %cst_41 [2] : vector<1x8x8xf32> to vector<1x8xf32>
    %130 = vector.shape_cast %129 : vector<1x8xf32> to vector<1x8x1xf32>
    %131 = vector.broadcast %130 : vector<1x8x1xf32> to vector<1x8x8xf32>
    %132 = arith.subf %128, %131 : vector<1x8x8xf32>
    %133 = math.exp %132 : vector<1x8x8xf32>
    %cst_42 = arith.constant dense<0.000000e+00> : vector<1x8xf32>
    %134 = vector.multi_reduction <add>, %133, %cst_42 [2] : vector<1x8x8xf32> to vector<1x8xf32>
    %135 = vector.shape_cast %134 : vector<1x8xf32> to vector<1x8x1xf32>
    "tpu.trace_start"() <{level = 10 : i32, message = "bqk,bkd->bqd"}> : () -> ()
    %cst_43 = arith.constant dense<0.000000e+00> : vector<1x8x4xf32>
    %136 = tpu.matmul %133, %127, %cst_43 {dimension_numbers = #tpu.dot_dimension_numbers<[2], [1], [1], [2], [0, 0, 0, 1, 1, 2], [0], [0]>} : vector<1x8x8xf32>, vector<1x8x4xf32>, vector<1x8x4xf32> -> vector<1x8x4xf32>
    "tpu.trace_stop"() : () -> ()
    %137 = tpu.reciprocal %135 : vector<1x8x1xf32> -> vector<1x8x1xf32>
    %138 = vector.broadcast %137 : vector<1x8x1xf32> to vector<1x8x4xf32>
    %139 = arith.mulf %136, %138 : vector<1x8x4xf32>
    %140 = tpu.concatenate %34, %49, %64, %79, %94, %109, %124, %139 in 2 : vector<1x8x4xf32>, vector<1x8x4xf32>, vector<1x8x4xf32>, vector<1x8x4xf32>, vector<1x8x4xf32>, vector<1x8x4xf32>, vector<1x8x4xf32>, vector<1x8x4xf32> -> vector<1x8x32xf32>
    %141 = vector.shape_cast %140 : vector<1x8x32xf32> to vector<8x32xf32>
    %c0_44 = arith.constant 0 : index
    %c0_45 = arith.constant 0 : index
    %142 = vector.load %arg5[%c0_44, %c0_45] : memref<32x32xf32, #tpu.memory_space<vmem>>, vector<32x32xf32>
    %cst_46 = arith.constant dense<0.000000e+00> : vector<8x32xf32>
    %143 = tpu.matmul %141, %142, %cst_46 {dimension_numbers = #tpu.dot_dimension_numbers<[1], [0], [0], [1], [0, 0, 1, 1], [], []>} : vector<8x32xf32>, vector<32x32xf32>, vector<8x32xf32> -> vector<8x32xf32>
    %c0_47 = arith.constant 0 : index
    %c0_48 = arith.constant 0 : index
    %144 = vector.load %arg7[%c0_47, %c0_48] : memref<3x32xf32, #tpu.memory_space<vmem>>, vector<3x32xf32>
    %145 = vector.extract_strided_slice %144 {offsets = [0, 0], sizes = [1, 32], strides = [1, 1]} : vector<3x32xf32> to vector<1x32xf32>
    %146 = vector.extract_strided_slice %144 {offsets = [1, 0], sizes = [1, 32], strides = [1, 1]} : vector<3x32xf32> to vector<1x32xf32>
    %147 = vector.extract_strided_slice %144 {offsets = [2, 0], sizes = [1, 32], strides = [1, 1]} : vector<3x32xf32> to vector<1x32xf32>
    %148 = arith.addf %1, %143 : vector<8x32xf32>
    %149 = vector.broadcast %145 : vector<1x32xf32> to vector<8x32xf32>
    %150 = arith.addf %148, %149 : vector<8x32xf32>
    %cst_49 = arith.constant dense<0.000000e+00> : vector<8xf32>
    %151 = vector.multi_reduction <add>, %150, %cst_49 [1] : vector<8x32xf32> to vector<8xf32>
    %152 = vector.shape_cast %151 : vector<8xf32> to vector<8x1xf32>
    %cst_50 = arith.constant 3.200000e+01 : f32
    %153 = vector.broadcast %cst_50 : f32 to vector<8x1xf32>
    %154 = arith.divf %152, %153 : vector<8x1xf32>
    %155 = vector.broadcast %154 : vector<8x1xf32> to vector<8x32xf32>
    %156 = arith.subf %150, %155 : vector<8x32xf32>
    %157 = arith.mulf %156, %156 : vector<8x32xf32>
    %cst_51 = arith.constant dense<0.000000e+00> : vector<8xf32>
    %158 = vector.multi_reduction <add>, %157, %cst_51 [1] : vector<8x32xf32> to vector<8xf32>
    %159 = vector.shape_cast %158 : vector<8xf32> to vector<8x1xf32>
    %cst_52 = arith.constant 3.200000e+01 : f32
    %160 = vector.broadcast %cst_52 : f32 to vector<8x1xf32>
    %161 = arith.divf %159, %160 : vector<8x1xf32>
    %cst_53 = arith.constant 9.99999974E-6 : f32
    %162 = vector.broadcast %cst_53 : f32 to vector<8x1xf32>
    %163 = arith.addf %161, %162 : vector<8x1xf32>
    %164 = math.rsqrt %163 : vector<8x1xf32>
    %165 = vector.broadcast %164 : vector<8x1xf32> to vector<8x32xf32>
    %166 = arith.mulf %156, %165 : vector<8x32xf32>
    %167 = vector.broadcast %146 : vector<1x32xf32> to vector<8x32xf32>
    %168 = arith.mulf %166, %167 : vector<8x32xf32>
    %169 = vector.broadcast %147 : vector<1x32xf32> to vector<8x32xf32>
    %170 = arith.addf %168, %169 : vector<8x32xf32>
    %171 = vector.shape_cast %170 : vector<8x32xf32> to vector<1x8x32xf32>
    %c0_54 = arith.constant 0 : index
    %c0_55 = arith.constant 0 : index
    %c0_56 = arith.constant 0 : index
    %172 = vector.load %arg8[%c0_54, %c0_55, %c0_56] : memref<1x8x32xf32, #tpu.memory_space<vmem>>, vector<1x8x32xf32>
    tpu.vector_store %arg8[%c0_54, %c0_55, %c0_56], %171 {strides = array<i32>} : memref<1x8x32xf32, #tpu.memory_space<vmem>>, vector<1x8x32xf32>,
    return
  }
  func.func @transform_0(%arg0: i32) -> (i32, i32, i32) {
    %c0_i32 = arith.constant 0 : i32
    %c0_i32_0 = arith.constant 0 : i32
    %c0_i32_1 = arith.constant 0 : i32
    return %arg0, %c0_i32, %c0_i32_0 : i32, i32, i32
  }
  func.func @transform_1(%arg0: i32) -> (i32, i32, i32) {
    %c0_i32 = arith.constant 0 : i32
    %c0_i32_0 = arith.constant 0 : i32
    %c0_i32_1 = arith.constant 0 : i32
    return %arg0, %c0_i32, %c0_i32_0 : i32, i32, i32
  }
  func.func @transform_2(%arg0: i32) -> (i32, i32) {
    %c0_i32 = arith.constant 0 : i32
    %c0_i32_0 = arith.constant 0 : i32
    %c0_i32_1 = arith.constant 0 : i32
    return %c0_i32, %c0_i32_0 : i32, i32
  }
  func.func @transform_3(%arg0: i32) -> (i32, i32) {
    %c0_i32 = arith.constant 0 : i32
    %c0_i32_0 = arith.constant 0 : i32
    %c0_i32_1 = arith.constant 0 : i32
    return %c0_i32, %c0_i32_0 : i32, i32
  }
  func.func @transform_4(%arg0: i32) -> (i32, i32) {
    %c0_i32 = arith.constant 0 : i32
    %c0_i32_0 = arith.constant 0 : i32
    %c0_i32_1 = arith.constant 0 : i32
    return %c0_i32, %c0_i32_0 : i32, i32
  }
  func.func @transform_5(%arg0: i32) -> (i32, i32) {
    %c0_i32 = arith.constant 0 : i32
    %c0_i32_0 = arith.constant 0 : i32
    %c0_i32_1 = arith.constant 0 : i32
    return %c0_i32, %c0_i32_0 : i32, i32
  }
  func.func @transform_6(%arg0: i32) -> (i32, i32) {
    %c0_i32 = arith.constant 0 : i32
    %c0_i32_0 = arith.constant 0 : i32
    %c0_i32_1 = arith.constant 0 : i32
    return %c0_i32, %c0_i32_0 : i32, i32
  }
  func.func @transform_7(%arg0: i32) -> (i32, i32, i32) {
    %c0_i32 = arith.constant 0 : i32
    %c0_i32_0 = arith.constant 0 : i32
    %c0_i32_1 = arith.constant 0 : i32
    return %arg0, %c0_i32, %c0_i32_0 : i32, i32, i32
  }
}

</mosaic_0001>

<bundles_post_ra>
// kernel: tpu_custom_call.1
= control target key start
LH: loop header
LB: loop body
LE: loop exit
PB: predicated region body
PF: predicated region fallthrough
CT: control target
= control target key end

     0   :  { %s3271_s0 = inlined_call_operand.hbm [shape: f32[2,8,32], index: 0, kind: input, shape index: {}]   ;;  %s3272_s1 = inlined_call_operand.hbm [shape: f32[2,8,32], index: 1, kind: input, shape index: {}]   ;;  %s3273_s2 = inlined_call_operand.hbm [shape: f32[32,32], index: 2, kind: input, shape index: {}]   ;;  %s3274_s3 = inlined_call_operand.hbm [shape: f32[32,64], index: 3, kind: input, shape index: {}]   ;;  %s3275_s4 = inlined_call_operand.hbm [shape: f32[32,32], index: 4, kind: input, shape index: {}]   ;;  %s3276_s5 = inlined_call_operand.vmem [shape: f32[1,96], index: 5, kind: input, shape index: {}]   ;;  %s3277_s6 = inlined_call_operand.vmem [shape: f32[3,32], index: 6, kind: input, shape index: {}]   ;;  %s3278_s7 = inlined_call_operand.hbm [shape: f32[2,8,32], index: 7, kind: output, shape index: {}]  }
   0x1   :  { %3284 = sst [smem:[#allocation18_spill]] %s3273_s2 }
   0x2   :  { %3285 = sst [smem:[#allocation19_spill]] %s3274_s3 }
   0x3   :  { %3286 = sst [smem:[#allocation20_spill]] %s3275_s4 }
   0x4   :  { %12 = vsyncpa [#allocation3], 0 }
   0x5   :  { %14 = vsyncpa [#allocation3 + $0x1], 0 }
   0x6   :  { %15 = vsyncpa [#allocation6], 0 }
   0x7   :  { %17 = vsyncpa [#allocation6 + $0x1], 0 }
   0x8   :  { %18 = vsyncpa [#allocation9], 0 }
   0x9   :  { %19 = vsyncpa [#allocation4], 0 }
   0xa   :  { %21 = vsyncpa [#allocation4 + $0x1], 0  ;;  %s2812_s24 = smov 0   ;;  %s2814_s25 = smov 0  }
   0xb   :  { %s2816_s26 = smov 0   ;;  %s2818_s27 = smov 0  }
   0xc LB: > { %s2833_s28 = sadd.s32 4294967295, %s2737_s27   ;;  %s2145_s29 = sadd.s32 4294967294, %s2737_s27   ;;  %s2737_s27 = sphi %s2818_s27, %s3312_s27   ;;  %s2733_s26 = sphi %s2816_s26, %s3311_s26   ;;  %s2729_s25 = sphi %s2814_s25, %s3310_s25   ;;  %s2725_s24 = sphi %s2812_s24, %s3309_s24  }
   0xd   : > { %p47_p0 = scmp.ne.s32.totalorder %s2729_s25, %s2725_s24  ;;  %p3279_p1 = scmp.eq.s32.totalorder %s2833_s28, 0 }
   0xe   : > { %p208_p3 = scmp.eq.s32.totalorder %s2145_s29, 1  ;;  %p2146_p5 = scmp.ge.s32.totalorder %s2737_s27, 1 }
   0xf   : > { %p2842_p4 = por %p3279_p1, %p47_p0  ;;  %p215_p7 = scmp.lt.s32.totalorder %s2737_s27, 3 }
  0x10   : > { %p2847_p6 = por %p208_p3, %p47_p0  ;;  %s2739_s10 = smov [#allocation7]  }
  0x11   : > { %s3287_s30 = scalar_select %p2842_p4, 1, 0 }
  0x12   : > { %s3288_s8 = scalar_select %p2847_p6, 1, 0 }
  0x13   : > { %p2852_p8 = pnand %p2146_p5, %p215_p7  ;;  %s227_s11 = sshll.u32 %s2739_s10, 4  ;;  %s2856_s11 = int_to_ptr.vmem [resolvable:$true] %s227_s11 }
  0x14   : > { %3289 = sst [smem:[#allocation17_spill]] %s3288_s8  ;;  %s2740_s13 = smov [#allocation8]  }
  0x15   : > { %s3290_s9 = scalar_select %p2852_p8, 1, 0 }
  0x16   : > { %p2390_p9 = pneg %p2852_p8  ;;  %s240_s14 = sshll.u32 %s2740_s13, 4  ;;  %s2867_s14 = int_to_ptr.vmem [resolvable:$true] %s240_s14 }
  0x17   : > { %s2741_s15 = smov [#allocation10]   ;;  %s3292_s2 = sld [smem:[#allocation18_spill]] }
  0x18   : > { %p2863_p11 = pnand %p2390_p9, %p3279_p1  ;;  %s2869_s16 = sshll.u32 %s2741_s15, 4  ;;  %s254_s16 = int_to_ptr.vmem [resolvable:$true] %s2869_s16 }
  0x1a   : > { %p2879_p13 = pneg %p2863_p11 }
  0x1d   : > { %s2515_s19 = scalar_lea.hbm %s3292_s2, 512 }
  0x1e   : > { %p2516_p12 = scmp.ne.s32.totalorder %s3292_s2, %s2515_s19  ;;  %p2522_p5 = scmp.lt.u32.totalorder %s2515_s19, %s3292_s2 }
  0x20   : > { %p2518_p0 = pnand %p2879_p13, %p2516_p12 }
  0x22   : > { %p2519_p3 = pneg %p2518_p0 }
  0x24   : > { %p2524_p7 = pnand %p2522_p5, %p2519_p3 }
  0x26   : > { %2527 = shalt.err (!%p2524_p7)
}
  0x27   : > { %s2528_s10 = scalar_lea.vmem %s2856_s11, 512  ;;  %p2536_p2 = scmp.lt.s32.totalorder %s2856_s11, %s2856_s11 }
  0x28   : > { %p2529_p9 = scmp.ne.s32.totalorder %s2856_s11, %s2528_s10  ;;  %p2537_p6 = scmp.lt.s32.totalorder %s2528_s10, %s2528_s10 }
  0x2a   : > { %p2531_p10 = pnand %p2529_p9, %p2879_p13  ;;  %p2538_p12 = por %p2537_p6, %p2536_p2 }
  0x2c   : > { %p2532_p1 = pneg %p2531_p10 }
  0x2e   : > { %p2539_p0 = pnand %p2538_p12, %p2532_p1 }
  0x30   : > { %2542 = shalt.err (!%p2539_p0)
}
  0x31   : > { %s2742_s13 = smov 128   ;;  %s2743_s15 = smov 8  }
  0x32   : > { %2393 = dma.hbm_to_vmem [thread:$0]  (!%p2863_p11), %s3292_s2, 512, %s2856_s11, [#allocation6], %s2742_s13, %s2742_s13, %s2743_s15  }
  0x33   : > { %s3294_s3 = sld [smem:[#allocation19_spill]] }
  0x39   : > { %s2543_s21 = scalar_lea.hbm %s3294_s3, 512 }
  0x3a   : > { %p2544_p1 = scmp.ne.s32.totalorder %s3294_s3, %s2543_s21  ;;  %p2550_p10 = scmp.lt.u32.totalorder %s2543_s21, %s3294_s3 }
  0x3c   : > { %p2546_p2 = pnand %p2544_p1, %p2879_p13 }
  0x3e   : > { %p2547_p6 = pneg %p2546_p2 }
  0x40   : > { %p2552_p3 = pnand %p2550_p10, %p2547_p6 }
  0x42   : > { %2555 = shalt.err (!%p2552_p3)
}
  0x43   : > { %s2556_s11 = scalar_lea.vmem %s2867_s14, 512  ;;  %p2564_p12 = scmp.lt.s32.totalorder %s2867_s14, %s2867_s14 }
  0x44   : > { %p2557_p5 = scmp.ne.s32.totalorder %s2867_s14, %s2556_s11  ;;  %p2565_p0 = scmp.lt.s32.totalorder %s2556_s11, %s2556_s11 }
  0x46   : > { %p2559_p7 = pnand %p2557_p5, %p2879_p13  ;;  %p2566_p1 = por %p2565_p0, %p2564_p12 }
  0x48   : > { %p2560_p9 = pneg %p2559_p7 }
  0x4a   : > { %p2567_p2 = pnand %p2566_p1, %p2560_p9 }
  0x4c   : > { %2570 = shalt.err (!%p2567_p2)
}
  0x4d   : > { %2396 = dma.hbm_to_vmem [thread:$0]  (!%p2863_p11), %s3294_s3, 512, %s2867_s14, [#allocation9], %s2742_s13, %s2742_s13, %s2743_s15  }
  0x4e   : > { %s3295_s4 = sld [smem:[#allocation20_spill]] }
  0x54   : > { %s2571_s20 = scalar_lea.hbm %s3295_s4, 512 }
  0x55   : > { %p2572_p6 = scmp.ne.s32.totalorder %s3295_s4, %s2571_s20  ;;  %p2578_p5 = scmp.lt.u32.totalorder %s2571_s20, %s3295_s4 }
  0x57   : > { %p2574_p10 = pnand %p2572_p6, %p2879_p13 }
  0x59   : > { %p2575_p3 = pneg %p2574_p10 }
  0x5b   : > { %p2580_p7 = pnand %p2578_p5, %p2575_p3 }
  0x5d   : > { %2583 = shalt.err (!%p2580_p7)
}
  0x5e   : > { %s2584_s11 = scalar_lea.vmem %s254_s16, 512  ;;  %p2592_p1 = scmp.lt.s32.totalorder %s254_s16, %s254_s16 }
  0x5f   : > { %p2585_p9 = scmp.ne.s32.totalorder %s254_s16, %s2584_s11  ;;  %p2593_p2 = scmp.lt.s32.totalorder %s2584_s11, %s2584_s11 }
  0x61   : > { %p2587_p12 = pnand %p2585_p9, %p2879_p13  ;;  %p2594_p4 = por %p2593_p2, %p2592_p1 }
  0x63   : > { %p2588_p0 = pneg %p2587_p12 }
  0x65   : > { %p2595_p8 = pnand %p2594_p4, %p2588_p0 }
  0x67   : > { %2598 = shalt.err (!%p2595_p8)
}
  0x68   : > { %2399 = dma.hbm_to_vmem [thread:$0]  (!%p2863_p11), %s3295_s4, 512, %s254_s16, [#allocation9], %s2742_s13, %s2742_s13, %s2743_s15  }
  0x69   : > { %s2952_s22 = sadd.s32 1, %s2737_s27   ;;  %s34_s17 = sadd.s32 1, %s2733_s26 }
  0x6a   : > { %s31_s12 = ssub.s32 %s2737_s27, %s2952_s22  ;;  %p41_p8 = scmp.ne.s32.totalorder %s2733_s26, %s2729_s25 }
  0x6b   : > { %p32_p4 = scmp.eq.s32.totalorder %s31_s12, 0  ;;  %p42_p13 = scmp.eq.s32.totalorder %s2737_s27, 0 }
  0x6c   : > { %p2414_p6 = scmp.lt.s32.totalorder %s2737_s27, 2  ;;  %p3296_p3 = scmp.eq.s32.totalorder %s2833_s28, 1 }
  0x6d   : > { %s2962_s18 = scalar_select %p32_p4, %s2733_s26, %s34_s17  }
  0x6e   : > { %p43_p10 = por %p42_p13, %p41_p8  ;;  %p2966_p5 = por %p3296_p3, %p41_p8 }
  0x6f   : > { %s273_s20 = sand.u32 1, %s2733_s26   ;;  %s2152_s21 = sshll.u32 %s2737_s27, 7 }
  0x70   : > { %s3297_s19 = scalar_select %p2966_p5, 1, 0 }
  0x71   : > { %s2972_s16 = sshll.u32 %s273_s20, 3  ;;  %s2977_s23 = scalar_lea.hbm %s3271_s0, %s2152_s21 }
  0x72   : > { %s277_s29 = scalar_lea.vmem [#allocation2], %s2972_s16  ;;  %p2980_p11 = pnand %p2414_p6, %p43_p10 }
  0x73   : > { %s284_s10 = sshll.u32 %s277_s29, 4  ;;  %s2989_s12 = scalar_lea.hbm %s3272_s1, %s2152_s21  ;;  %s2984_s10 = int_to_ptr.vmem [resolvable:$true] %s284_s10 }
  0x74   : > { %s274_s17 = scalar_lea.sflag [#allocation3], %s273_s20  ;;  %s2599_s13 = scalar_lea.hbm %s2977_s23, 128 }
  0x75   : > { %p2600_p7 = scmp.ne.s32.totalorder %s2977_s23, %s2599_s13  ;;  %p2601_p9 = pneg %p2980_p11 }
  0x76   : > { %s2604_s2 = scalar_lea.hbm %s3271_s0, 256  ;;  %p2605_p1 = scmp.lt.u32.totalorder %s2977_s23, %s3271_s0 }
  0x77   : > { %p2602_p12 = pnand %p2601_p9, %p2600_p7  ;;  %p2606_p2 = scmp.lt.u32.totalorder %s2604_s2, %s2599_s13 }
  0x78   : > { %p2608_p8 = scmp.lt.u32.totalorder %s2599_s13, %s2977_s23 }
  0x79   : > { %p2603_p0 = pneg %p2602_p12  ;;  %p2607_p4 = por %p2606_p2, %p2605_p1 }
  0x7b   : > { %p2609_p13 = por %p2608_p8, %p2607_p4 }
  0x7d   : > { %p2610_p6 = pnand %p2609_p13, %p2603_p0 }
  0x7f   : > { %2613 = shalt.err (!%p2610_p6)
}
  0x80   : > { %s2614_s20 = scalar_lea.vmem %s2984_s10, 128  ;;  %s2744_s21 = smov [#allocation2]  }
  0x81   : > { %p2615_p10 = scmp.ne.s32.totalorder %s2984_s10, %s2614_s20  ;;  %s2619_s14 = sshll.u32 %s2744_s21, 4  ;;  %s2620_s14 = int_to_ptr.vmem [resolvable:$false] %s2619_s14 }
  0x82   : > { %s2621_s3 = scalar_lea.vmem %s2620_s14, 256  ;;  %p2622_p12 = scmp.lt.s32.totalorder %s2984_s10, %s2620_s14 }
  0x83   : > { %p2617_p3 = pnand %p2615_p10, %p2601_p9  ;;  %p2623_p1 = scmp.lt.s32.totalorder %s2621_s3, %s2614_s20 }
  0x85   : > { %p2618_p7 = pneg %p2617_p3  ;;  %p2624_p2 = por %p2623_p1, %p2622_p12 }
  0x87   : > { %p2625_p4 = pnand %p2624_p2, %p2618_p7 }
  0x89   : > { %2628 = shalt.err (!%p2625_p4)
}
  0x8a   : > { %2403 = dma.hbm_to_vmem [thread:$0]  (!%p2980_p11), %s2977_s23, 128, %s2984_s10, %s274_s17  }
  0x8b   : > { %s291_s2 = sand.u32 1, %s2737_s27   ;;  %s295_s4 = scalar_lea.vmem [#allocation5], %s2972_s16 }
  0x8c   : > { %s302_s8 = sshll.u32 %s295_s4, 4  ;;  %s292_s13 = scalar_lea.sflag [#allocation6], %s291_s2  ;;  %s303_s8 = int_to_ptr.vmem [resolvable:$true] %s302_s8 }
  0x8d   : > { %s2629_s15 = scalar_lea.hbm %s2989_s12, 128  ;;  %s2634_s21 = scalar_lea.hbm %s3272_s1, 256 }
  0x8e   : > { %p2630_p0 = scmp.ne.s32.totalorder %s2989_s12, %s2629_s15  ;;  %p2635_p6 = scmp.lt.u32.totalorder %s2989_s12, %s3272_s1 }
  0x8f   : > { %p2636_p10 = scmp.lt.u32.totalorder %s2634_s21, %s2629_s15  ;;  %p2638_p7 = scmp.lt.u32.totalorder %s2629_s15, %s2989_s12 }
  0x90   : > { %p2632_p8 = pnand %p2630_p0, %p2601_p9 }
  0x91   : > { %p2637_p3 = por %p2636_p10, %p2635_p6 }
  0x92   : > { %p2633_p13 = pneg %p2632_p8 }
  0x93   : > { %p2639_p12 = por %p2638_p7, %p2637_p3 }
  0x95   : > { %p2640_p1 = pnand %p2639_p12, %p2633_p13 }
  0x97   : > { %2643 = shalt.err (!%p2640_p1)
}
  0x98   : > { %s2644_s16 = scalar_lea.vmem %s303_s8, 128  ;;  %s2745_s23 = smov [#allocation5]  }
  0x99   : > { %p2645_p2 = scmp.ne.s32.totalorder %s303_s8, %s2644_s16  ;;  %s2649_s10 = sshll.u32 %s2745_s23, 4  ;;  %s2650_s10 = int_to_ptr.vmem [resolvable:$false] %s2649_s10 }
  0x9a   : > { %s2651_s17 = scalar_lea.vmem %s2650_s10, 256  ;;  %p2652_p8 = scmp.lt.s32.totalorder %s303_s8, %s2650_s10 }
  0x9b   : > { %p2647_p4 = pnand %p2645_p2, %p2601_p9  ;;  %p2653_p5 = scmp.lt.s32.totalorder %s2651_s17, %s2644_s16 }
  0x9d   : > { %p2648_p0 = pneg %p2647_p4  ;;  %p2654_p6 = por %p2653_p5, %p2652_p8 }
  0x9f   : > { %p2655_p10 = pnand %p2654_p6, %p2648_p0 }
  0xa1   : > { %2658 = shalt.err (!%p2655_p10)
}
  0xa2   : > { %2406 = dma.hbm_to_vmem [thread:$0]  (!%p2980_p11), %s2989_s12, 128, %s303_s8, %s292_s13  }
  0xa3   : > { %p3299_p13 = scmp.ne.s32.totalorder %s3290_s9, 0 }
  0xa4   : > { %s3040_s2 = sand.u32 (!%p3299_p13), 1, %s2729_s25   ;;  %p3300_p5 = scmp.ne.s32.totalorder (!%p3299_p13), %s3287_s30, 0 }
  0xa5   : > { %311 = sbr.rel (%p3299_p13) target bundleno = 1838 (0x72e), region = 48  ;;  %s3043_s4 = sshll.u32 (!%p3299_p13), %s3040_s2, 3 }
  0xa6   : > { %s314_s15 = scalar_lea.sflag (!%p3299_p13), [#allocation3], %s3040_s2  ;;  %s317_s29 = scalar_lea.vmem (!%p3299_p13), [#allocation2], %s3043_s4 }
  0xac   : > { %2704 = dma.done.wait (%p3300_p5), %s314_s15, 128  }
  0xad   : > { %2706 = vsyncadd (%p3300_p5), %s314_s15, 4294967168  ;;  %s322_s9 = sand.u32 1, %s2833_s28   ;;  %s326_s12 = scalar_lea.vmem [#allocation5], %s3043_s4 }
  0xae   : > { %s323_s11 = scalar_lea.sflag [#allocation6], %s322_s9 }
  0xaf   : > { %2708 = dma.done.wait (%p3300_p5), %s323_s11, 128  }
  0xb0   : > { %2710 = vsyncadd (%p3300_p5), %s323_s11, 4294967168  ;;  %p3301_p11 = scmp.eq.s32.totalorder %s2833_s28, 0 }
  0xb2   : > { %2712 = dma.done.wait (%p3301_p11), [#allocation6], 512   ;;  %p3302_p9 = pmov %p3301_p11 }
  0xb4   : > { %2714 = vsyncadd (%p3302_p9), [#allocation6], 4294966784  ;;  %p3303_p3 = pmov %p3302_p9 }
  0xb6   : > { %2716 = dma.done.wait (%p3303_p3), [#allocation9], 1024   ;;  %p3304_p7 = pmov %p3303_p3 }
  0xb7   : > { %v2746_v0 = vmov 0.0|0.0   ;;  %vm2747_vm0 = vmmov 0   ;;  %v2748_v1 = vmov 0.0   ;;  %v377_v2 = vld [vmem:[#allocation7] sm:$0xff]  ;;  %v378_v3 = vld [vmem:[#allocation7 + $0x8] sm:$0xff]  ;;  %v379_v7 = vld [vmem:[#allocation7 + $0x10] sm:$0xff] }
  0xb8   : > { %2718 = vsyncadd (%p3304_p7), [#allocation9], 4294966272  ;;  %2354 = vmatprep.subr.bf16.mxu0 %v2746_v0  ;;  %2360 = vmatprep.subr.bf16.mxu1 %v2746_v0  ;;  %v461_v4 = vld [vmem:[#allocation8] sm:$0xff]  ;;  %v2355_v5 = vpack.c.bf16 %v378_v3, %v377_v2  ;;  %v462_v6 = vld [vmem:[#allocation8 + $0x8] sm:$0xff]  ;;  %s2749_s13 = smov 96   ;;  %vm387_vm1 = vcmask 261120  }
  0xb9   : > { %2249 = vmatprep.mubr.msk.f32.mxu0 %vm2747_vm0, %v2748_v1  ;;  %2260 = vmatprep.mubr.msk.f32.mxu1 %vm2747_vm0, %v2748_v1  ;;  %v380_v8 = vld [vmem:[#allocation7 + $0x18] sm:$0xff]  ;;  %v2361_v9 = vpack.c.bf16 %v462_v6, %v461_v4  ;;  %v463_v10 = vld [vmem:[#allocation8 + $0x10] sm:$0xff]  ;;  %v2162_v13 = vld [vmem:[%s3276_s5] ss:$0 sm:$0xff]  ;;  %vm541_vm2 = vcmask 31744   ;;  %s2750_s20 = smov 124  }
  0xba   : > { %v464_v11 = vld [vmem:[#allocation8 + $0x18] sm:$0xff]  ;;  %2356 = vmatpush3.bf16.msra.mxu0 %v2355_v5  ;;  %v2358_v12 = vpack.c.bf16 %v380_v8, %v379_v7  ;;  %465 = vrot.lane.b32.xlu0 %v2162_v13, %s2749_s13  ;;  %v3079_v15 = vld [vmem:[%s317_s29] sm:$0xff]  ;;  %s2751_s21 = smov 120   ;;  %s2752_s14 = smov 116   ;;  %vm618_vm3 = vcmask 64512   ;;  %vm1891_vm4 = vcmask 97280  }
  0xbb   : > { %2362 = vmatpush3.bf16.msra.mxu1 %v2361_v9  ;;  %2357 = vmatprep.subr.bf16.mxu0 %v2746_v0  ;;  %v2364_v14 = vpack.c.bf16 %v464_v11, %v463_v10  ;;  %v375_v16 = vld [vmem:[%s326_s12] sm:$0xff]  ;;  %s2753_s3 = smov 112   ;;  %s2754_s16 = smov 108   ;;  %vm1893_vm5 = vcmask 130048   ;;  %vm1895_vm6 = vcmask 162816   ;;  %vm1897_vm7 = vcmask 195584  }
  0xbc   : > { %2363 = vmatprep.subr.bf16.mxu1 %v2746_v0  ;;  %s2755_s23 = smov 104   ;;  %s2756_s10 = smov 100   ;;  %vm1899_vm8 = vcmask 228352  }
  0xbd   : > { %s2757_s17 = smov 92   ;;  %s2758_s15 = smov 88  }
  0xbe   : > { %2359 = vmatpush3.bf16.msra.mxu0 %v2358_v12  ;;  %s2759_s29 = smov 84   ;;  %s2760_s9 = smov 80  }
  0xbf   : > { %2365 = vmatpush3.bf16.msra.mxu1 %v2364_v14  ;;  %2273 = vmatprep.subr.mxu0 %v2748_v1  ;;  %s2761_s11 = smov 72   ;;  %s2762_s12 = smov 76  }
  0xc0   : > { %2263 = vmatprep.subr.mxu1 %v2748_v1  ;;  %s2763_s30 = smov 68   ;;  %s2764_s8 = smov 4  }
  0xc1   : > { %2250 = vmatmul.mubr.msk.f32.vlgmr.msra.gmra.mrb[0].mxu0 %vm387_vm1, %v3079_v15  ;;  %p3305_p1 = scmp.ne.s32.totalorder %s3297_s19, 0 }
  0xc2   : > { %2261 = vmatmul.mubr.msk.f32.vlgmr.msra.gmra.mrb[0].mxu1 %vm387_vm1, %v375_v16  ;;  %2275 = vmatprep.mubr.msk.f32.mxu0 %vm2747_vm0, %v2748_v1 }
  0xc3   : > { %2265 = vmatprep.mubr.msk.f32.mxu1 %vm2747_vm0, %v2748_v1 }
 0x12c   : > { %v466_v17 = vpop.permute.xlu0 %465 }
 0x194   : > { %v457_v18 = vpop.f32.mrb[0].mxu0 }
 0x195   : > { %v458_v19 = vadd.f32 %v2162_v13, %v457_v18  ;;  %v537_v20 = vpop.f32.mrb[0].mxu1  ;;  %v2251_v21 = vpop.f32.mrb[1].mxu0 }
 0x196   : > { %v3092_v22 = vadd.f32 %v537_v20, %v466_v17  ;;  %v2262_v23 = vpop.f32.mrb[1].mxu1 }
 0x197   : > { %706 = vrot.lane.b32.xlu1 %v458_v19, %s2750_s20 }
 0x198   : > { %708 = vrot.lane.b32.xlu0 %v3092_v22, %s2750_s20  ;;  %2264 = vmatpush3.xpose.msk.msra.mxu1 %vm541_vm2, %v3092_v22  ;;  %s2766_s20 = smov 12  }
 0x199   : > { %2268 = vmatprep.subr.mxu1 %v2748_v1 }
 0x19b   : > { %2266 = vmatmul.mubr.msk.f32.vlgmr.msra.gmra.mrb[2].mxu1 %vm541_vm2, %v458_v19  ;;  %873 = vrot.lane.b32.xlu1 %v3092_v22, %s2751_s21 }
 0x19c   : > { %871 = vrot.lane.b32.xlu0 %v458_v19, %s2751_s21  ;;  %2270 = vmatprep.mubr.msk.f32.mxu1 %vm2747_vm0, %v2748_v1  ;;  %s2767_s21 = smov 16  }
 0x19f   : > { %1038 = vrot.lane.b32.xlu1 %v3092_v22, %s2752_s14 }
 0x1a0   : > { %1036 = vrot.lane.b32.xlu0 %v458_v19, %s2752_s14  ;;  %s2768_s14 = smov 20  }
 0x1a3   : > { %1203 = vrot.lane.b32.xlu1 %v3092_v22, %s2753_s3 }
 0x1a4   : > { %1201 = vrot.lane.b32.xlu0 %v458_v19, %s2753_s3  ;;  %s2769_s3 = smov 24  }
 0x1a7   : > { %1368 = vrot.lane.b32.xlu1 %v3092_v22, %s2754_s16 }
 0x1a8   : > { %1366 = vrot.lane.b32.xlu0 %v458_v19, %s2754_s16  ;;  %s2770_s16 = smov 28  }
 0x1ab   : > { %1533 = vrot.lane.b32.xlu1 %v3092_v22, %s2755_s23 }
 0x1ac   : > { %1531 = vrot.lane.b32.xlu0 %v458_v19, %s2755_s23 }
 0x1af   : > { %1698 = vrot.lane.b32.xlu1 %v3092_v22, %s2756_s10 }
 0x1b0   : > { %1696 = vrot.lane.b32.xlu0 %v458_v19, %s2756_s10 }
 0x1b3   : > { %628 = vrot.lane.b32.xlu1 %v3092_v22, %s2749_s13  ;;  %s2765_s13 = smov 8  }
 0x1b4   : > { %793 = vrot.lane.b32.xlu0 %v3092_v22, %s2757_s17  ;;  %s2191_s17 = sshll.u32 %s2833_s28, 7  ;;  %s2771_s28 = smov [#allocation11]  }
 0x1b7   : > { %958 = vrot.lane.b32.xlu1 %v3092_v22, %s2758_s15  ;;  %s373_s15 = scalar_lea.vmem [#allocation11], %s3043_s4  ;;  %s2663_s4 = sshll.u32 %s2771_s28, 4  ;;  %s2664_s4 = int_to_ptr.vmem [resolvable:$false] %s2663_s4 }
 0x1bb   : > { %1123 = vrot.lane.b32.xlu1 %v3092_v22, %s2759_s29  ;;  %s2024_s29 = sshll.u32 %s373_s15, 4  ;;  %s3228_s29 = int_to_ptr.vmem [resolvable:$true] %s2024_s29 }
 0x1bc   : > { %p2666_p0 = scmp.lt.s32.totalorder %s3228_s29, %s2664_s4 }
 0x209   : > { %v707_v24 = vpop.permute.xlu1 %706 }
 0x20a   : > { %v709_v25 = vpop.permute.xlu0 %708 }
 0x20b   : > { %2274 = vmatpush3.xpose.msk.msra.mxu0 %vm541_vm2, %v709_v25 }
 0x20c   : > { %2283 = vmatprep.subr.mxu0 %v2748_v1 }
 0x20d   : > { %v874_v26 = vpop.permute.xlu1 %873 }
 0x20e   : > { %v872_v27 = vpop.permute.xlu0 %871  ;;  %2276 = vmatmul.mubr.msk.f32.vlgmr.msra.gmra.mrb[2].mxu0 %vm541_vm2, %v707_v24 }
 0x20f   : > { %2284 = vmatpush3.xpose.msk.msra.mxu0 %vm541_vm2, %v874_v26  ;;  %2285 = vmatprep.mubr.msk.f32.mxu0 %vm2747_vm0, %v2748_v1 }
 0x210   : > { %2293 = vmatprep.subr.mxu0 %v2748_v1 }
 0x211   : > { %v1039_v28 = vpop.permute.xlu1 %1038 }
 0x212   : > { %v1037_v29 = vpop.permute.xlu0 %1036  ;;  %2286 = vmatmul.mubr.msk.f32.vlgmr.msra.gmra.mrb[4].mxu0 %vm541_vm2, %v872_v27 }
 0x213   : > { %2294 = vmatpush3.xpose.msk.msra.mxu0 %vm541_vm2, %v1039_v28  ;;  %2295 = vmatprep.mubr.msk.f32.mxu0 %vm2747_vm0, %v2748_v1 }
 0x214   : > { %2303 = vmatprep.subr.mxu0 %v2748_v1 }
 0x215   : > { %v1204_v30 = vpop.permute.xlu1 %1203 }
 0x216   : > { %v1202_v31 = vpop.permute.xlu0 %1201  ;;  %2296 = vmatmul.mubr.msk.f32.vlgmr.msra.gmra.mrb[6].mxu0 %vm541_vm2, %v1037_v29 }
 0x217   : > { %2304 = vmatpush3.xpose.msk.msra.mxu0 %vm541_vm2, %v1204_v30  ;;  %2305 = vmatprep.mubr.msk.f32.mxu0 %vm2747_vm0, %v2748_v1 }
 0x218   : > { %2313 = vmatprep.subr.mxu0 %v2748_v1 }
 0x219   : > { %v1369_v32 = vpop.permute.xlu1 %1368 }
 0x21a   : > { %v1367_v33 = vpop.permute.xlu0 %1366  ;;  %2306 = vmatmul.mubr.msk.f32.vlgmr.msra.gmra.mrb[8].mxu0 %vm541_vm2, %v1202_v31 }
 0x21b   : > { %2314 = vmatpush3.xpose.msk.msra.mxu0 %vm541_vm2, %v1369_v32  ;;  %2315 = vmatprep.mubr.msk.f32.mxu0 %vm2747_vm0, %v2748_v1 }
 0x21c   : > { %2323 = vmatprep.subr.mxu0 %v2748_v1 }
 0x21d   : > { %v1534_v34 = vpop.permute.xlu1 %1533 }
 0x21e   : > { %2316 = vmatmul.mubr.msk.f32.vlgmr.msra.gmra.mrb[10].mxu0 %vm541_vm2, %v1367_v33  ;;  %v1532_v35 = vpop.permute.xlu0 %1531 }
 0x21f   : > { %2324 = vmatpush3.xpose.msk.msra.mxu0 %vm541_vm2, %v1534_v34  ;;  %2325 = vmatprep.mubr.msk.f32.mxu0 %vm2747_vm0, %v2748_v1 }
 0x220   : > { %2333 = vmatprep.subr.mxu0 %v2748_v1 }
 0x221   : > { %v1699_v36 = vpop.permute.xlu1 %1698 }
 0x222   : > { %2326 = vmatmul.mubr.msk.f32.vlgmr.msra.gmra.mrb[12].mxu0 %vm541_vm2, %v1532_v35  ;;  %v1697_v37 = vpop.permute.xlu0 %1696 }
 0x223   : > { %2334 = vmatpush3.xpose.msk.msra.mxu0 %vm541_vm2, %v1699_v36  ;;  %2335 = vmatprep.mubr.msk.f32.mxu0 %vm2747_vm0, %v2748_v1 }
 0x224   : > { %2366 = vmatprep.subr.bf16.mxu0 %v2746_v0 }
 0x225   : > { %v629_v38 = vpop.permute.xlu1 %628 }
 0x226   : > { %2336 = vmatmul.mubr.msk.f32.vlgmr.msra.gmra.mrb[14].mxu0 %vm541_vm2, %v1697_v37  ;;  %2269 = vmatpush3.msra.mxu1 %v629_v38  ;;  %v794_v5 = vpop.permute.xlu0 %793 }
 0x227   : > { %2278 = vmatprep.subr.mxu1 %v2748_v1  ;;  %2351 = vmatprep.mubr.msk.f32.mxu0 %vm2747_vm0, %v2748_v1 }
 0x229   : > { %v959_v57 = vpop.permute.xlu1 %958 }
 0x22d   : > { %v1124_v60 = vpop.permute.xlu1 %1123 }
 0x26e   : > { %v614_v39 = vpop.f32.mrb[2].mxu1 }
 0x26f   : > { %v2267_v40 = vpop.f32.mrb[3].mxu1  ;;  %v619_v41 = vsel %vm618_vm3, %v614_v39, -inf }
 0x270   : > { %620 = vmax.xlane.f32.xlu1 %v619_v41 }
 0x281   : > { %1288 = vrot.lane.b32.xlu1 %v3092_v22, %s2760_s9 }
 0x2e1   : > { %v780_v42 = vpop.f32.mrb[2].mxu0 }
 0x2e2   : > { %v2277_v43 = vpop.f32.mrb[3].mxu0  ;;  %v784_v44 = vsel %vm618_vm3, %v780_v42, -inf }
 0x2e3   : > { %785 = vmax.xlane.f32.xlu0 %v784_v44 }
 0x2e5   : > { %v945_v45 = vpop.f32.mrb[4].mxu0 }
 0x2e6   : > { %v2287_v46 = vpop.f32.mrb[5].mxu0  ;;  %v949_v47 = vsel %vm618_vm3, %v945_v45, -inf }
 0x2e7   : > { %950 = vmax.xlane.f32.xlu0 %v949_v47 }
 0x2e9   : > { %v1110_v48 = vpop.f32.mrb[6].mxu0 }
 0x2ea   : > { %v2297_v49 = vpop.f32.mrb[7].mxu0  ;;  %v1114_v50 = vsel %vm618_vm3, %v1110_v48, -inf }
 0x2eb   : > { %1115 = vmax.xlane.f32.xlu1 %v1114_v50 }
 0x2ed   : > { %v1275_v51 = vpop.f32.mrb[8].mxu0 }
 0x2ee   : > { %v2307_v52 = vpop.f32.mrb[9].mxu0  ;;  %v1279_v53 = vsel %vm618_vm3, %v1275_v51, -inf }
 0x2ef   : > { %1280 = vmax.xlane.f32.xlu0 %v1279_v53 }
 0x2f1   : > { %v1440_v54 = vpop.f32.mrb[10].mxu0 }
 0x2f2   : > { %v2317_v55 = vpop.f32.mrb[11].mxu0  ;;  %v1444_v56 = vsel %vm618_vm3, %v1440_v54, -inf }
 0x2f3   : > { %1445 = vmax.xlane.f32.xlu1 %v1444_v56 }
 0x2f5   : > { %v3155_v58 = vpop.f32.mrb[12].mxu0 }
 0x2f6   : > { %v2327_v59 = vpop.f32.mrb[13].mxu0  ;;  %v1609_v6 = vsel %vm618_vm3, %v3155_v58, -inf }
 0x2f9   : > { %v3157_v61 = vpop.f32.mrb[14].mxu0 }
 0x2fa   : > { %v2337_v62 = vpop.f32.mrb[15].mxu0  ;;  %v1774_v7 = vsel %vm618_vm3, %v3157_v61, -inf }
 0x2fd   : > { %v621_v63 = vpop.xlane.xlu1 %620 }
 0x2fe   : > { %v622_v2 = vsub.f32 %v614_v39, %v621_v63  ;;  %v1901_v63 = vld [vmem:[#allocation10] sm:$0xff] }
 0x300   : > { %v623_v3 = vmul.f32 1.442695, %v622_v2  ;;  %v1902_v2 = vld [vmem:[#allocation10 + $0x8] sm:$0xff] }
 0x301   : > { %v1289_v11 = vpop.permute.xlu1 %1288 }
 0x302   : > { %2481 = vpow2.f32 %v623_v3  ;;  %v2367_v3 = vpack.c.bf16 %v1902_v2, %v1901_v63 }
 0x304   : > { %1618 = vrot.lane.b32.xlu1 %v3092_v22, %s2761_s11  ;;  %2368 = vmatpush3.bf16.msra.mxu0 %v2367_v3 }
 0x305   : > { %1453 = vrot.lane.b32.xlu0 %v3092_v22, %s2762_s12  ;;  %2369 = vmatprep.subr.bf16.mxu0 %v2746_v0  ;;  %s3226_s12 = scalar_lea.hbm %s3278_s7, %s2191_s17 }
 0x30c   : > { %v3161_v4 = vpop.eup %2481 }
 0x30d   : > { %2271 = vmatmul.mubr.msk.f32.vlgmr.msra.gmra.mrb[4].mxu1 %vm618_vm3, %v3161_v4  ;;  %v625_v47 = vsel %vm618_vm3, %v3161_v4, 0.0 }
 0x30e   : > { %2279 = vmatpush3.msra.mxu1 %v794_v5  ;;  %2280 = vmatprep.mubr.msk.f32.mxu1 %vm2747_vm0, %v2748_v1 }
 0x30f   : > { %2288 = vmatprep.subr.mxu1 %v2748_v1 }
 0x324   : > { %1610 = vmax.xlane.f32.xlu0 %v1609_v6 }
 0x328   : > { %1775 = vmax.xlane.f32.xlu0 %v1774_v7 }
 0x33e   : > { %1783 = vrot.lane.b32.xlu0 %v3092_v22, %s2763_s30  ;;  %s2011_s30 = scalar_lea.sflag [#allocation4], %s3040_s2 }
 0x370   : > { %v786_v8 = vpop.xlane.xlu0 %785 }
 0x371   : > { %v787_v9 = vsub.f32 %v780_v42, %v786_v8 }
 0x373   : > { %v788_v10 = vmul.f32 1.442695, %v787_v9 }
 0x374   : > { %v951_v12 = vpop.xlane.xlu0 %950 }
 0x375   : > { %2483 = vpow2.f32 %v788_v10  ;;  %v952_v13 = vsub.f32 %v945_v45, %v951_v12 }
 0x377   : > { %v953_v14 = vmul.f32 1.442695, %v952_v13 }
 0x378   : > { %v1116_v16 = vpop.xlane.xlu1 %1115 }
 0x379   : > { %2485 = vpow2.f32 %v953_v14  ;;  %v1117_v17 = vsub.f32 %v1110_v48, %v1116_v16 }
 0x37b   : > { %v1118_v18 = vmul.f32 1.442695, %v1117_v17 }
 0x37c   : > { %v1281_v19 = vpop.xlane.xlu0 %1280 }
 0x37d   : > { %2487 = vpow2.f32 %v1118_v18  ;;  %v1282_v20 = vsub.f32 %v1275_v51, %v1281_v19  ;;  %v1903_v18 = vld [vmem:[#allocation10 + $0x10] sm:$0xff]  ;;  %v1904_v19 = vld [vmem:[#allocation10 + $0x18] sm:$0xff] }
 0x37e   : > { %v2370_v0 = vpack.c.bf16 %v1904_v19, %v1903_v18 }
 0x37f   : > { %v2484_v21 = vpop.eup %2483  ;;  %v1283_v23 = vmul.f32 1.442695, %v1282_v20 }
 0x380   : > { %2281 = vmatmul.mubr.msk.f32.vlgmr.msra.gmra.mrb[6].mxu1 %vm618_vm3, %v2484_v21  ;;  %v1446_v22 = vpop.xlane.xlu1 %1445  ;;  %v790_v24 = vsel %vm618_vm3, %v2484_v21, 0.0  ;;  %v1454_v32 = vpop.permute.xlu0 %1453  ;;  %2371 = vmatpush3.bf16.msra.mxu0 %v2370_v0 }
 0x381   : > { %2489 = vpow2.f32 %v1283_v23  ;;  %2289 = vmatpush3.msra.mxu1 %v959_v57  ;;  %v1447_v25 = vsub.f32 %v1440_v54, %v1446_v22  ;;  %791 = vadd.xlane.f32.xlu1 %v790_v24 }
 0x382   : > { %2290 = vmatprep.mubr.msk.f32.mxu1 %vm2747_vm0, %v2748_v1  ;;  %2298 = vmatprep.subr.mxu1 %v2748_v1 }
 0x383   : > { %v2486_v26 = vpop.eup %2485  ;;  %v1448_v27 = vmul.f32 1.442695, %v1447_v25 }
 0x384   : > { %2291 = vmatmul.mubr.msk.f32.vlgmr.msra.gmra.mrb[8].mxu1 %vm618_vm3, %v2486_v26  ;;  %v955_v28 = vsel %vm618_vm3, %v2486_v26, 0.0  ;;  %v1619_v35 = vpop.permute.xlu1 %1618 }
 0x385   : > { %2491 = vpow2.f32 %v1448_v27  ;;  %2299 = vmatpush3.msra.mxu1 %v1124_v60  ;;  %956 = vadd.xlane.f32.xlu0 %v955_v28 }
 0x386   : > { %2300 = vmatprep.mubr.msk.f32.mxu1 %vm2747_vm0, %v2748_v1  ;;  %2308 = vmatprep.subr.mxu1 %v2748_v1 }
 0x387   : > { %v2488_v29 = vpop.eup %2487 }
 0x388   : > { %2301 = vmatmul.mubr.msk.f32.vlgmr.msra.gmra.mrb[10].mxu1 %vm618_vm3, %v2488_v29  ;;  %v1120_v30 = vsel %vm618_vm3, %v2488_v29, 0.0 }
 0x389   : > { %2309 = vmatpush3.msra.mxu1 %v1289_v11  ;;  %1121 = vadd.xlane.f32.xlu0 %v1120_v30 }
 0x38a   : > { %2310 = vmatprep.mubr.msk.f32.mxu1 %vm2747_vm0, %v2748_v1  ;;  %2318 = vmatprep.subr.mxu1 %v2748_v1 }
 0x38b   : > { %v2490_v31 = vpop.eup %2489 }
 0x38c   : > { %2311 = vmatmul.mubr.msk.f32.vlgmr.msra.gmra.mrb[12].mxu1 %vm618_vm3, %v2490_v31  ;;  %v1285_v33 = vsel %vm618_vm3, %v2490_v31, 0.0 }
 0x38d   : > { %2319 = vmatpush3.msra.mxu1 %v1454_v32  ;;  %1286 = vadd.xlane.f32.xlu1 %v1285_v33 }
 0x38e   : > { %2320 = vmatprep.mubr.msk.f32.mxu1 %vm2747_vm0, %v2748_v1  ;;  %2328 = vmatprep.subr.mxu1 %v2748_v1 }
 0x38f   : > { %v2492_v34 = vpop.eup %2491 }
 0x390   : > { %2321 = vmatmul.mubr.msk.f32.vlgmr.msra.gmra.mrb[14].mxu1 %vm618_vm3, %v2492_v34  ;;  %v1450_v36 = vsel %vm618_vm3, %v2492_v34, 0.0 }
 0x391   : > { %2329 = vmatpush3.msra.mxu1 %v1619_v35  ;;  %1451 = vadd.xlane.f32.xlu0 %v1450_v36 }
 0x392   : > { %2330 = vmatprep.mubr.msk.f32.mxu1 %vm2747_vm0, %v2748_v1  ;;  %2338 = vmatprep.subr.mxu1 %v2748_v1 }
 0x3b1   : > { %v1611_v37 = vpop.xlane.xlu0 %1610 }
 0x3b2   : > { %v1612_v38 = vsub.f32 %v3155_v58, %v1611_v37 }
 0x3b4   : > { %v1613_v39 = vmul.f32 1.442695, %v1612_v38 }
 0x3b5   : > { %v1776_v40 = vpop.xlane.xlu0 %1775 }
 0x3b6   : > { %2493 = vpow2.f32 %v1613_v39  ;;  %v1777_v41 = vsub.f32 %v3157_v61, %v1776_v40 }
 0x3b8   : > { %v1778_v42 = vmul.f32 1.442695, %v1777_v41 }
 0x3b9   : > { %v1784_v44 = vpop.permute.xlu0 %1783 }
 0x3ba   : > { %2495 = vpow2.f32 %v1778_v42 }
 0x3c0   : > { %v2494_v43 = vpop.eup %2493 }
 0x3c1   : > { %2331 = vmatmul.mubr.msk.f32.vlgmr.msra.gmra.mrb[16].mxu1 %vm618_vm3, %v2494_v43  ;;  %v1615_v45 = vsel %vm618_vm3, %v2494_v43, 0.0 }
 0x3c2   : > { %2339 = vmatpush3.msra.mxu1 %v1784_v44  ;;  %1616 = vadd.xlane.f32.xlu1 %v1615_v45 }
 0x3c3   : > { %2340 = vmatprep.mubr.msk.f32.mxu1 %vm2747_vm0, %v2748_v1 }
 0x3c4   : > { %v2496_v46 = vpop.eup %2495 }
 0x3c5   : > { %2341 = vmatmul.mubr.msk.f32.vlgmr.msra.gmra.mrb[18].mxu1 %vm618_vm3, %v2496_v46  ;;  %v1780_v48 = vsel %vm618_vm3, %v2496_v46, 0.0  ;;  %v1980_v46 = vlaneseq }
 0x3c6   : > { %626 = vadd.xlane.f32.xlu1 %v625_v47  ;;  %1781 = vadd.xlane.f32.xlu0 %v1780_v48 }
 0x3c7   : > { %v1981_v47 = vshrl.u32 %v1980_v46, 7 }
 0x3c9   : > { %v2001_v48 = vsub.s32 1, %v1981_v47 }
 0x3e0   : > { %v3208_v49 = vpop.f32.mrb[4].mxu1 }
 0x3e1   : > { %v2272_v50 = vpop.f32.mrb[5].mxu1 }
 0x3e2   : > { %v1978_v50 = vld [vmem:[%s3277_s6] sm:$0x7] }
 0x40e   : > { %v792_v51 = vpop.xlane.xlu1 %791 }
 0x40f   : > { %2497 = vrcp.f32 %v792_v51  ;;  %v2002_v51 = vrot.slane %v1978_v50, %v2001_v48 }
 0x412   : > { %v957_v52 = vpop.xlane.xlu0 %956 }
 0x413   : > { %2499 = vrcp.f32 %v957_v52 }
 0x416   : > { %v1122_v53 = vpop.xlane.xlu0 %1121 }
 0x417   : > { %2501 = vrcp.f32 %v1122_v53  ;;  %v1982_v53 = vsub.s32 0, %v1981_v47 }
 0x419   : > { %v2498_v54 = vpop.eup %2497 }
 0x41a   : > { %v1287_v1 = vpop.xlane.xlu1 %1286 }
 0x41b   : > { %2503 = vrcp.f32 %v1287_v1  ;;  %v1983_v1 = vrot.slane %v1978_v50, %v1982_v53 }
 0x41d   : > { %v2500_v59 = vpop.eup %2499 }
 0x41e   : > { %v1452_v58 = vpop.xlane.xlu0 %1451 }
 0x41f   : > { %2505 = vrcp.f32 %v1452_v58 }
 0x421   : > { %v2502_v4 = vpop.eup %2501 }
 0x425   : > { %v2504_v8 = vpop.eup %2503 }
 0x429   : > { %v2506_v12 = vpop.eup %2505 }
 0x44f   : > { %v1617_v17 = vpop.xlane.xlu1 %1616 }
 0x450   : > { %2507 = vrcp.f32 %v1617_v17 }
 0x453   : > { %v865_v55 = vpop.f32.mrb[6].mxu1  ;;  %v1782_v20 = vpop.xlane.xlu0 %1781 }
 0x454   : > { %v870_v56 = vmul.f32 %v2498_v54, %v865_v55  ;;  %v2282_v57 = vpop.f32.mrb[7].mxu1  ;;  %2509 = vrcp.f32 %v1782_v20  ;;  %v627_v29 = vpop.xlane.xlu1 %626 }
 0x455   : > { %2511 = vrcp.f32 %v627_v29 }
 0x456   : > { %1862 = vrot.lane.b32.xlu0 %v870_v56, %s2764_s8  ;;  %s2659_s8 = scalar_lea.vmem %s3228_s29, 128 }
 0x457   : > { %v1030_v60 = vpop.f32.mrb[8].mxu1  ;;  %p2660_p12 = scmp.ne.s32.totalorder %s3228_s29, %s2659_s8 }
 0x458   : > { %v1035_v61 = vmul.f32 %v2500_v59, %v1030_v60  ;;  %v2292_v62 = vpop.f32.mrb[9].mxu1 }
 0x459   : > { %p2661_p2 = pnand %p2660_p12, %p3305_p1 }
 0x45a   : > { %1866 = vrot.lane.b32.xlu1 %v1035_v61, %s2765_s13  ;;  %v2508_v21 = vpop.eup %2507  ;;  %s2665_s13 = scalar_lea.vmem %s2664_s4, 256 }
 0x45b   : > { %v1195_v5 = vpop.f32.mrb[10].mxu1  ;;  %p2662_p4 = pneg %p2661_p2  ;;  %p2667_p8 = scmp.lt.s32.totalorder %s2665_s13, %s2659_s8 }
 0x45c   : > { %v1200_v6 = vmul.f32 %v2502_v4, %v1195_v5  ;;  %v2302_v7 = vpop.f32.mrb[11].mxu1 }
 0x45d   : > { %p2668_p6 = por %p2667_p8, %p2666_p0 }
 0x45e   : > { %1870 = vrot.lane.b32.xlu1 %v1200_v6, %s2766_s20  ;;  %v2510_v25 = vpop.eup %2509 }
 0x45f   : > { %v1360_v9 = vpop.f32.mrb[12].mxu1  ;;  %v2512_v32 = vpop.eup %2511  ;;  %p2669_p10 = pnand %p2668_p6, %p2662_p4 }
 0x460   : > { %v1365_v10 = vmul.f32 %v2504_v8, %v1360_v9  ;;  %v2312_v11 = vpop.f32.mrb[13].mxu1  ;;  %v705_v34 = vmul.f32 %v2512_v32, %v3208_v49  ;;  %v2006_v49 = vsub.s32 2, %v1981_v47 }
 0x462   : > { %1874 = vrot.lane.b32.xlu0 %v1365_v10, %s2767_s21  ;;  %v2007_v52 = vrot.slane %v1978_v50, %v2006_v49 }
 0x463   : > { %v1525_v13 = vpop.f32.mrb[14].mxu1 }
 0x464   : > { %v1530_v14 = vmul.f32 %v2506_v12, %v1525_v13  ;;  %v2322_v16 = vpop.f32.mrb[15].mxu1 }
 0x466   : > { %1878 = vrot.lane.b32.xlu1 %v1530_v14, %s2768_s14 }
 0x494   : > { %v1690_v23 = vpop.f32.mrb[16].mxu1 }
 0x495   : > { %v1695_v22 = vmul.f32 %v2508_v21, %v1690_v23  ;;  %v2332_v24 = vpop.f32.mrb[17].mxu1 }
 0x497   : > { %1882 = vrot.lane.b32.xlu0 %v1695_v22, %s2769_s3 }
 0x498   : > { %v1855_v26 = vpop.f32.mrb[18].mxu1 }
 0x499   : > { %v1860_v27 = vmul.f32 %v2510_v25, %v1855_v26  ;;  %v2342_v28 = vpop.f32.mrb[19].mxu1 }
 0x49b   : > { %1886 = vrot.lane.b32.xlu1 %v1860_v27, %s2770_s16 }
 0x4c8   : > { %v1863_v31 = vpop.permute.xlu0 %1862 }
 0x4c9   : > { %v1889_v36 = vsel %vm541_vm2, %v705_v34, %v1863_v31 }
 0x4cc   : > { %v1867_v30 = vpop.permute.xlu1 %1866 }
 0x4cd   : > { %v1890_v37 = vsel %vm618_vm3, %v1889_v36, %v1867_v30 }
 0x4d0   : > { %v1871_v33 = vpop.permute.xlu1 %1870 }
 0x4d1   : > { %v1892_v39 = vsel %vm1891_vm4, %v1890_v37, %v1871_v33 }
 0x4d4   : > { %v1875_v35 = vpop.permute.xlu0 %1874 }
 0x4d5   : > { %v1894_v41 = vsel %vm1893_vm5, %v1892_v39, %v1875_v35 }
 0x4d8   : > { %v1879_v38 = vpop.permute.xlu1 %1878 }
 0x4d9   : > { %v1896_v42 = vsel %vm1895_vm6, %v1894_v41, %v1879_v38 }
 0x509   : > { %v1883_v40 = vpop.permute.xlu0 %1882 }
 0x50a   : > { %v1898_v43 = vsel %vm1897_vm7, %v1896_v42, %v1883_v40 }
 0x50d   : > { %v1887_v44 = vpop.permute.xlu1 %1886 }
 0x50e   : > { %v1900_v45 = vsel %vm1899_vm8, %v1898_v43, %v1887_v44 }
 0x50f   : > { %2352 = vmatmul.mubr.msk.f32.vlgmr.msra.gmra.mrb[16].mxu0 %vm387_vm1, %v1900_v45 }
 0x5e2   : > { %v1974_v54 = vpop.f32.mrb[16].mxu0 }
 0x5e3   : > { %v1979_v55 = vadd.f32 %v1974_v54, %v3079_v15  ;;  %v2353_v56 = vpop.f32.mrb[17].mxu0 }
 0x5e5   : > { %v1984_v57 = vadd.f32 %v1983_v1, %v1979_v55 }
 0x5e7   : > { %v1985_v58 = vsel %vm387_vm1, %v1984_v57, 0.0 }
 0x5e8   : > { %1986 = vadd.xlane.f32.xlu0 %v1985_v58 }
 0x675   : > { %v1987_v59 = vpop.xlane.xlu0 %1986 }
 0x676   : > { %v1989_v60 = vmul.f32 0.03125, %v1987_v59 }
 0x678   : > { %v1990_v61 = vsub.f32 %v1984_v57, %v1989_v60 }
 0x67a   : > { %v1991_v62 = vmul.f32 %v1990_v61, %v1990_v61 }
 0x67c   : > { %v1992_v63 = vsel %vm387_vm1, %v1991_v62, 0.0 }
 0x67d   : > { %1993 = vadd.xlane.f32.xlu1 %v1992_v63 }
 0x70a   : > { %v1994_v2 = vpop.xlane.xlu1 %1993 }
 0x70b   : > { %v1995_v3 = vmul.f32 0.03125, %v1994_v2 }
 0x70d   : > { %v1996_v4 = vadd.f32 1e-05, %v1995_v3 }
 0x70f   : > { %2513 = vrsqrt.f32 %v1996_v4 }
 0x719   : > { %v2514_v15 = vpop.eup %2513 }
 0x71a   : > { %v1998_v5 = vmul.f32 %v2514_v15, %v1990_v61 }
 0x71c   : > { %v2003_v6 = vmul.f32 %v2002_v51, %v1998_v5 }
 0x71e   : > { %v2008_v7 = vadd.f32 %v2007_v52, %v2003_v6 }
 0x720   : > { %2009 = vst.msk [vmem:[%s373_s15] sm:$0xff] %vm387_vm1, %v2008_v7 }
 0x721   : > { %2672 = shalt.err (!%p2669_p10)
}
 0x722   : > { %s2673_s2 = scalar_lea.hbm %s3226_s12, 128  ;;  %s2677_s14 = scalar_lea.hbm %s3278_s7, 256 }
 0x723   : > { %p2674_p13 = scmp.ne.s32.totalorder %s3226_s12, %s2673_s2  ;;  %p2678_p9 = scmp.lt.u32.totalorder %s3226_s12, %s3278_s7 }
 0x724   : > { %p2679_p3 = scmp.lt.u32.totalorder %s2677_s14, %s2673_s2  ;;  %p2681_p12 = scmp.lt.u32.totalorder %s2673_s2, %s3226_s12 }
 0x725   : > { %p2675_p5 = pnand %p2674_p13, %p3305_p1 }
 0x726   : > { %p2680_p7 = por %p2679_p3, %p2678_p9 }
 0x727   : > { %p2676_p11 = pneg %p2675_p5 }
 0x728   : > { %p2682_p2 = por %p2681_p12, %p2680_p7 }
 0x72a   : > { %p2683_p4 = pnand %p2682_p2, %p2676_p11 }
 0x72c   : > { %2686 = shalt.err (!%p2683_p4)
}
 0x72d   : > { %2388 = dma.vmem_to_hbm [thread:$0]  (%p3305_p1), %s3228_s29, 128, %s3226_s12, %s2011_s30  }
 0x72e PF: > { %s3306_s23 = sld [smem:[#allocation17_spill]]  ;;  %s2036_s10 = sand.u32 1, %s2725_s24  }
 0x72f   : > { %p3308_p8 = scmp.ge.s32.totalorder %s2737_s27, 2  ;;  %s2037_s17 = scalar_lea.sflag [#allocation4], %s2036_s10 }
 0x734   : > { %p3307_p0 = scmp.ne.s32.totalorder %s3306_s23, 0 }
 0x736   : > { %p2408_p6 = pnand %p3308_p8, %p3307_p0 }
 0x738   : > { %2720 = dma.done.wait (!%p2408_p6), %s2037_s17, 128  }
 0x739   : > { %2722 = vsyncadd (!%p2408_p6), %s2037_s17, 4294967168  ;;  %p24_p10 = scmp.ge.s32.totalorder %s2952_s22, 4   ;;  %s3309_s24 = smov %s2729_s25 }
 0x73a   : > { %s3310_s25 = smov %s2733_s26  ;;  %s3311_s26 = smov %s2962_s18 }
 0x73b   : > { %s3312_s27 = smov %s2952_s22  ;;  %26 = sbr.rel (!%p24_p10) target bundleno = 12 (0xc), region = 118 }
 0x742   :  { %2042 = vsyncpa [#allocation3], 1 }
 0x743   :  { %2044 = vsyncpa [#allocation3 + $0x1], 1 }
 0x744   :  { %2045 = vsyncpa [#allocation6], 1 }
 0x745   :  { %2047 = vsyncpa [#allocation6 + $0x1], 1 }
 0x746   :  { %2048 = vsyncpa [#allocation9], 1 }
 0x747   :  { %2049 = vsyncpa [#allocation4], 1 }
 0x748   :  { %2051 = vsyncpa [#allocation4 + $0x1], 1 }

</bundles_post_ra>
